<compile_context>
chip_gen: v7x
topology: tpu7x:2x2x1
jax: 0.10.0
libtpu: 0.0.40
codegen_flags: <defaults>
</compile_context>

<pallas_src>
import functools
import math

import jax
import jax.numpy as jnp
from jax.experimental import pallas as pl
from jax.experimental.pallas import tpu as pltpu


# ----------------------------------------------------------------------------
# Kernel: grid = (batch_blocks, num_layers).  One decoder layer per grid step,
# activation carried across the layer axis in VMEM scratch.
# ----------------------------------------------------------------------------
def _fused_decoder_kernel(tgt_ref, mem_ref, lin_w_ref, lin_b_ref,
                          wq_ref, bq_ref, wkv_ref, bkv_ref, wo_ref, bo_ref,
                          w1_ref, b1_ref, w2_ref, b2_ref,
                          g1_ref, be1_ref, g2_ref, be2_ref,
                          o_ref, x_scr, *, nhead):
    eps = 1e-5
    BB, L, d = mem_ref.shape
    din = tgt_ref.shape[2]
    M = BB * L
    hd = d // nhead
    scale = 1.0 / math.sqrt(float(hd))

    layer = pl.program_id(1)
    num_layers = pl.num_programs(1)

    # ---- input Linear: only on the first layer step of this batch block -----
    @pl.when(layer == 0)
    def _():
        tgt2d = tgt_ref[...].reshape(M, din)              # free: last dim unchanged
        x_scr[...] = (jnp.dot(tgt2d, lin_w_ref[...],
                              preferred_element_type=jnp.float32)
                      + lin_b_ref[...])

    x = x_scr[...]                                        # (M, d) running activation
    mem2d = mem_ref[...].reshape(M, d)                    # (M, d) query source

    # ---- dense projections on the full M rows (K|V fused into one matmul) ---
    q = (jnp.dot(mem2d, wq_ref[0], preferred_element_type=jnp.float32)
         + bq_ref[0]) * scale                             # (M, d)
    kv = (jnp.dot(x, wkv_ref[0], preferred_element_type=jnp.float32)
          + bkv_ref[0])                                   # (M, 2d)
    k = kv[:, :d]
    v = kv[:, d:]

    q3 = q.reshape(BB, L, d)                              # free relayouts
    k3 = k.reshape(BB, L, d)
    v3 = v.reshape(BB, L, d)

    # ---- per-head attention on the small score / context tensors ------------
    ctx_parts = []
    for h in range(nhead):                                # nhead is small & static
        lo = h * hd
        qh = q3[:, :, lo:lo + hd]                         # (BB, L, hd)
        kh = k3[:, :, lo:lo + hd]
        vh = v3[:, :, lo:lo + hd]
        s = jax.lax.dot_general(qh, kh, (((2,), (2,)), ((0,), (0,))),
                                preferred_element_type=jnp.float32)   # (BB, L, L)
        s = s - jnp.max(s, axis=-1, keepdims=True)
        p = jnp.exp(s)
        p = p * pl.reciprocal(jnp.sum(p, axis=-1, keepdims=True), approx=False)
        ctx_parts.append(
            jax.lax.dot_general(p, vh, (((2,), (1,)), ((0,), (0,))),
                                preferred_element_type=jnp.float32))  # (BB, L, hd)
    ctx = jnp.concatenate(ctx_parts, axis=-1).reshape(M, d)           # concat heads

    # Output projection: one dense (M,d)@(d,d) matmul (full-K contraction).
    attn = jnp.dot(ctx, wo_ref[0], preferred_element_type=jnp.float32) + bo_ref[0]

    # ---- residual + LayerNorm1 (dropout == identity in eval) ----------------
    y = x + attn
    mu = jnp.mean(y, axis=-1, keepdims=True)
    var = jnp.mean(jnp.square(y - mu), axis=-1, keepdims=True)
    y = (y - mu) * jax.lax.rsqrt(var + eps) * g1_ref[0] + be1_ref[0]

    # ---- feedforward ---------------------------------------------------------
    h1 = jnp.maximum(
        jnp.dot(y, w1_ref[0], preferred_element_type=jnp.float32) + b1_ref[0],
        0.0)
    ff = jnp.dot(h1, w2_ref[0], preferred_element_type=jnp.float32) + b2_ref[0]

    # ---- residual + LayerNorm2 ----------------------------------------------
    z = y + ff
    mu2 = jnp.mean(z, axis=-1, keepdims=True)
    var2 = jnp.mean(jnp.square(z - mu2), axis=-1, keepdims=True)
    xn = (z - mu2) * jax.lax.rsqrt(var2 + eps) * g2_ref[0] + be2_ref[0]

    x_scr[...] = xn                                       # carry to next layer step

    @pl.when(layer == num_layers - 1)
    def _():
        o_ref[...] = xn.reshape(BB, L, d)


# ----------------------------------------------------------------------------
# Host-side parameter packing (layout plumbing, done once).
# ----------------------------------------------------------------------------
def _pack_params(params):
    layers = params["layers"]
    stack = lambda name: jnp.stack([p[name] for p in layers], axis=0)
    return {
        "lin_w": params["lin_w"],                                   # (din, d)
        "lin_b": params["lin_b"],                                   # (1, d)
        "wq": stack("wq"),                                          # (NL, d, d)
        "bq": stack("bq"),                                          # (NL, 1, d)
        # fused K|V weights along the output-feature axis: (NL, d, 2d)
        "wkv": jnp.stack([jnp.concatenate([p["wk"], p["wv"]], axis=1)
                          for p in layers], axis=0),
        "bkv": jnp.stack([jnp.concatenate([p["bk"], p["bv"]], axis=1)
                          for p in layers], axis=0),                # (NL, 1, 2d)
        "wo": stack("wo"), "bo": stack("bo"),
        "w1": stack("w1"), "b1": stack("b1"),
        "w2": stack("w2"), "b2": stack("b2"),
        "g1": stack("g1"), "be1": stack("be1"),
        "g2": stack("g2"), "be2": stack("be2"),
    }


def _choose_block_b(B, L, target_rows=256):
    """Largest BB dividing B with BB*L <= target_rows, keeping >=2 grid steps."""
    best = 1
    for bb in range(1, B + 1):
        if B % bb:
            continue
        if B >= 2 and (B // bb) < 2:
            continue                      # keep both v7x TensorCores busy
        if bb * L <= target_rows:
            best = bb
    return best


def _vmem_limit_bytes(block_b, L, din, d, dff, nhead, itemsize=4):
    """Explicit scoped-VMEM budget computed from the actual footprint + headroom."""
    M = block_b * L
    blocks = 2 * (M * din + 2 * M * d)                       # tgt/mem/out, double-buffered
    const = 2 * (din * d + d)                                # input-linear params
    per_layer = d * d + d * 2 * d + d * d + d * dff + dff * d + 8 * d + dff
    weights = 2 * per_layer                                  # streamed, double-buffered
    scratch = M * d
    interm = M * (din + 5 * d + dff) + nhead * block_b * L * L
    need = itemsize * (blocks + const + weights + scratch + interm)
    return int(min(need * 1.5 + (8 << 20), 100 << 20))


# ----------------------------------------------------------------------------
# Wrapper: single pallas_call for the whole decoder.
# ----------------------------------------------------------------------------
def masked_transformer_decoder(tgt, memory, params, nhead, block_b=None):
    B, L, din = tgt.shape
    d = memory.shape[-1]
    num_layers = len(params["layers"])
    dff = params["layers"][0]["w1"].shape[1]
    pk = _pack_params(params)

    if block_b is None:
        block_b = _choose_block_b(B, L)
    assert B % block_b == 0, (B, block_b)
    num_bb = B // block_b

    def const_spec(arr):                                   # fetched once (index constant)
        nd = arr.ndim
        return pl.BlockSpec(arr.shape, lambda b, l, _nd=nd: (0,) * _nd)

    def layer_spec(arr):                                   # streamed per layer
        nd = arr.ndim
        blk = (1,) + arr.shape[1:]
        return pl.BlockSpec(blk, lambda b, l, _nd=nd: (l,) + (0,) * (_nd - 1))

    tgt_spec = pl.BlockSpec((block_b, L, din), lambda b, l: (b, 0, 0))
    mem_spec = pl.BlockSpec((block_b, L, d), lambda b, l: (b, 0, 0))
    out_spec = pl.BlockSpec((block_b, L, d), lambda b, l: (b, 0, 0))

    names = ("wq", "bq", "wkv", "bkv", "wo", "bo",
             "w1", "b1", "w2", "b2", "g1", "be1", "g2", "be2")
    in_specs = ([tgt_spec, mem_spec, const_spec(pk["lin_w"]), const_spec(pk["lin_b"])]
                + [layer_spec(pk[n]) for n in names])

    kernel = functools.partial(_fused_decoder_kernel, nhead=nhead)

    return pl.pallas_call(
        kernel,
        out_shape=jax.ShapeDtypeStruct((B, L, d), jnp.float32),
        grid=(num_bb, num_layers),
        in_specs=in_specs,
        out_specs=out_spec,
        scratch_shapes=[pltpu.VMEM((block_b * L, d), jnp.float32)],
        compiler_params=pltpu.CompilerParams(
            dimension_semantics=("parallel", "arbitrary"),
            vmem_limit_bytes=_vmem_limit_bytes(block_b, L, din, d, dff, nhead)),
    )(tgt, memory, pk["lin_w"], pk["lin_b"], *[pk[n] for n in names])


# ----------------------------------------------------------------------------
# Parameter construction (deterministic, in-script) — weights stored
# pre-transposed as (in_features, out_features).
# ----------------------------------------------------------------------------
def init_params(key, num_layers, d_model, nhead, dim_feedforward, bbx_dim, in_dim=256):
    keys = jax.random.split(key, 2 + num_layers)

    def dense(k, fan_in, fan_out):
        return (jax.random.normal(k, (fan_in, fan_out), jnp.float32)
                / jnp.sqrt(jnp.float32(fan_in)))

    params = {
        "lin_w": dense(keys[0], in_dim, bbx_dim),
        "lin_b": 0.01 * jax.random.normal(keys[1], (1, bbx_dim), jnp.float32),
        "layers": [],
    }
    d, dff = d_model, dim_feedforward
    for i in range(num_layers):
        lk = jax.random.split(keys[2 + i], 10)
        layer = {
            "wq": dense(lk[0], d, d), "wk": dense(lk[1], d, d), "wv": dense(lk[2], d, d),
            "bq": 0.01 * jax.random.normal(lk[3], (1, d), jnp.float32),
            "bk": 0.01 * jax.random.normal(lk[4], (1, d), jnp.float32),
            "bv": 0.01 * jax.random.normal(lk[5], (1, d), jnp.float32),
            "wo": dense(lk[6], d, d),
            "bo": jnp.zeros((1, d), jnp.float32),
            "w1": dense(lk[7], d, dff),
            "b1": 0.01 * jax.random.normal(lk[8], (1, dff), jnp.float32),
            "w2": dense(lk[9], dff, d),
            "b2": jnp.zeros((1, d), jnp.float32),
            "g1": jnp.ones((1, d), jnp.float32), "be1": jnp.zeros((1, d), jnp.float32),
            "g2": jnp.ones((1, d), jnp.float32), "be2": jnp.zeros((1, d), jnp.float32),
        }
        params["layers"].append(layer)
    return params


# ----------------------------------------------------------------------------
# Pure-JAX reference (for correctness check)
# ----------------------------------------------------------------------------
def _layer_norm(x, g, b, eps=1e-5):
    mu = jnp.mean(x, axis=-1, keepdims=True)
    var = jnp.mean((x - mu) ** 2, axis=-1, keepdims=True)
    return (x - mu) * jax.lax.rsqrt(var + eps) * g + b


def reference(tgt, memory, params, nhead):
    x = tgt @ params["lin_w"] + params["lin_b"][0]
    B, L, d = x.shape
    hd = d // nhead
    for p in params["layers"]:
        q = memory @ p["wq"] + p["bq"][0]
        k = x @ p["wk"] + p["bk"][0]
        v = x @ p["wv"] + p["bv"][0]
        qh = q.reshape(B, L, nhead, hd).transpose(0, 2, 1, 3)
        kh = k.reshape(B, L, nhead, hd).transpose(0, 2, 1, 3)
        vh = v.reshape(B, L, nhead, hd).transpose(0, 2, 1, 3)
        s = jnp.einsum("bhqd,bhkd->bhqk", qh, kh) / jnp.sqrt(jnp.float32(hd))
        pw = jax.nn.softmax(s, axis=-1)
        o = jnp.einsum("bhqk,bhkd->bhqd", pw, vh).transpose(0, 2, 1, 3).reshape(B, L, d)
        attn = o @ p["wo"] + p["bo"][0]
        x1 = _layer_norm(x + attn, p["g1"][0], p["be1"][0])
        ff = jnp.maximum(x1 @ p["w1"] + p["b1"][0], 0.0) @ p["w2"] + p["b2"][0]
        x = _layer_norm(x1 + ff, p["g2"][0], p["be2"][0])
    return x


# ----------------------------------------------------------------------------
if __name__ == "__main__":
    # Small shapes consistent with the module:
    #   transformer_d_model (input feature dim of the first Linear) = 256,
    #   bbx_dim == d_model so the attention / residual maths is well-posed.
    num_layers = 2
    d_model = 32
    nhead = 4
    dim_feedforward = 64
    bbx_dim = d_model
    B, L = 2, 8

    root = jax.random.PRNGKey(0)
    k_tgt, k_mem, k_par = jax.random.split(root, 3)

    tgt = jax.random.normal(k_tgt, (B, L, 256), jnp.float32)
    memory = jax.random.normal(k_mem, (B, L, d_model), jnp.float32)
    params = init_params(k_par, num_layers, d_model, nhead, dim_feedforward, bbx_dim)

    out = jax.block_until_ready(masked_transformer_decoder(tgt, memory, params, nhead))
    ref = jax.block_until_ready(reference(tgt, memory, params, nhead))

    assert out.shape == (B, L, bbx_dim), out.shape
    assert bool(jnp.all(jnp.isfinite(out)))
    max_diff = float(jnp.max(jnp.abs(out - ref)))
    assert max_diff < 5e-3, f"max |pallas - ref| = {max_diff}"

    print("KERNEL_OK")
</pallas_src>

<mosaic_0001>
module attributes {stable_mosaic.version = 11 : i64} {
  func.func @_fused_decoder_kernel(%arg0: i32, %arg1: i32, %arg2: memref<1x8x256xf32, #tpu.memory_space<vmem>>, %arg3: memref<1x8x32xf32, #tpu.memory_space<vmem>>, %arg4: memref<256x32xf32, #tpu.memory_space<vmem>>, %arg5: memref<1x32xf32, #tpu.memory_space<vmem>>, %arg6: memref<1x32x32xf32, #tpu.memory_space<vmem>>, %arg7: memref<1x1x32xf32, #tpu.memory_space<vmem>>, %arg8: memref<1x32x64xf32, #tpu.memory_space<vmem>>, %arg9: memref<1x1x64xf32, #tpu.memory_space<vmem>>, %arg10: memref<1x32x32xf32, #tpu.memory_space<vmem>>, %arg11: memref<1x1x32xf32, #tpu.memory_space<vmem>>, %arg12: memref<1x32x64xf32, #tpu.memory_space<vmem>>, %arg13: memref<1x1x64xf32, #tpu.memory_space<vmem>>, %arg14: memref<1x64x32xf32, #tpu.memory_space<vmem>>, %arg15: memref<1x1x32xf32, #tpu.memory_space<vmem>>, %arg16: memref<1x1x32xf32, #tpu.memory_space<vmem>>, %arg17: memref<1x1x32xf32, #tpu.memory_space<vmem>>, %arg18: memref<1x1x32xf32, #tpu.memory_space<vmem>>, %arg19: memref<1x1x32xf32, #tpu.memory_space<vmem>>, %arg20: memref<1x8x32xf32, #tpu.memory_space<vmem>>, %arg21: memref<8x32xf32, #tpu.memory_space<vmem>>) attributes {dimension_semantics = [#tpu.dimension_semantics<parallel>, #tpu.dimension_semantics<arbitrary>], iteration_bounds = array<i64: 2, 2>, scalar_prefetch = 0 : i64, scratch_operands = 1 : i64, tpu.core_type = #tpu.core_type<tc>, window_params = [{transform_indices = @transform_0, window_bounds = array<i64: 1, 8, 256>}, {transform_indices = @transform_1, window_bounds = array<i64: 1, 8, 32>}, {pipeline_mode = #tpu.pipeline_mode<synchronous>, transform_indices = @transform_2, window_bounds = array<i64: 256, 32>}, {pipeline_mode = #tpu.pipeline_mode<synchronous>, transform_indices = @transform_3, window_bounds = array<i64: 1, 32>}, {transform_indices = @transform_4, window_bounds = array<i64: 1, 32, 32>}, {transform_indices = @transform_5, window_bounds = array<i64: 1, 1, 32>}, {transform_indices = @transform_6, window_bounds = array<i64: 1, 32, 64>}, {transform_indices = @transform_7, window_bounds = array<i64: 1, 1, 64>}, {transform_indices = @transform_8, window_bounds = array<i64: 1, 32, 32>}, {transform_indices = @transform_9, window_bounds = array<i64: 1, 1, 32>}, {transform_indices = @transform_10, window_bounds = array<i64: 1, 32, 64>}, {transform_indices = @transform_11, window_bounds = array<i64: 1, 1, 64>}, {transform_indices = @transform_12, window_bounds = array<i64: 1, 64, 32>}, {transform_indices = @transform_13, window_bounds = array<i64: 1, 1, 32>}, {transform_indices = @transform_14, window_bounds = array<i64: 1, 1, 32>}, {transform_indices = @transform_15, window_bounds = array<i64: 1, 1, 32>}, {transform_indices = @transform_16, window_bounds = array<i64: 1, 1, 32>}, {transform_indices = @transform_17, window_bounds = array<i64: 1, 1, 32>}, {transform_indices = @transform_18, window_bounds = array<i64: 1, 8, 32>}]} {
    %c0_i32 = arith.constant 0 : i32
    %0 = arith.cmpi eq, %arg1, %c0_i32 : i32
    %1 = arith.extui %0 : i1 to i32
    %c0_i32_0 = arith.constant 0 : i32
    %2 = arith.cmpi ne, %1, %c0_i32_0 : i32
    scf.if %2 {
      %c0_82 = arith.constant 0 : index
      %c0_83 = arith.constant 0 : index
      %c0_84 = arith.constant 0 : index
      %170 = vector.load %arg2[%c0_82, %c0_83, %c0_84] : memref<1x8x256xf32, #tpu.memory_space<vmem>>, vector<1x8x256xf32>
      %171 = vector.shape_cast %170 : vector<1x8x256xf32> to vector<8x256xf32>
      %c0_85 = arith.constant 0 : index
      %c0_86 = arith.constant 0 : index
      %172 = vector.load %arg4[%c0_85, %c0_86] : memref<256x32xf32, #tpu.memory_space<vmem>>, vector<256x32xf32>
      %cst_87 = arith.constant dense<0.000000e+00> : vector<8x32xf32>
      %173 = tpu.matmul %171, %172, %cst_87 {dimension_numbers = #tpu.dot_dimension_numbers<[1], [0], [0], [1], [0, 0, 1, 1], [], []>} : vector<8x256xf32>, vector<256x32xf32>, vector<8x32xf32> -> vector<8x32xf32>
      %c0_88 = arith.constant 0 : index
      %c0_89 = arith.constant 0 : index
      %174 = vector.load %arg5[%c0_88, %c0_89] : memref<1x32xf32, #tpu.memory_space<vmem>>, vector<1x32xf32>
      %175 = vector.broadcast %174 : vector<1x32xf32> to vector<8x32xf32>
      %176 = arith.addf %173, %175 : vector<8x32xf32>
      %c0_90 = arith.constant 0 : index
      %c0_91 = arith.constant 0 : index
      %177 = vector.load %arg21[%c0_90, %c0_91] : memref<8x32xf32, #tpu.memory_space<vmem>>, vector<8x32xf32>
      tpu.vector_store %arg21[%c0_90, %c0_91], %176 {strides = array<i32>} : memref<8x32xf32, #tpu.memory_space<vmem>>, vector<8x32xf32>,
    } else {
    }
    %c0 = arith.constant 0 : index
    %c0_1 = arith.constant 0 : index
    %3 = vector.load %arg21[%c0, %c0_1] : memref<8x32xf32, #tpu.memory_space<vmem>>, vector<8x32xf32>
    %c0_2 = arith.constant 0 : index
    %c0_3 = arith.constant 0 : index
    %c0_4 = arith.constant 0 : index
    %4 = vector.load %arg3[%c0_2, %c0_3, %c0_4] : memref<1x8x32xf32, #tpu.memory_space<vmem>>, vector<1x8x32xf32>
    %5 = vector.shape_cast %4 : vector<1x8x32xf32> to vector<8x32xf32>
    %c0_5 = arith.constant 0 : index
    %c0_6 = arith.constant 0 : index
    %c0_7 = arith.constant 0 : index
    %6 = vector.load %arg6[%c0_5, %c0_6, %c0_7] : memref<1x32x32xf32, #tpu.memory_space<vmem>>, vector<1x32x32xf32>
    %7 = vector.shape_cast %6 : vector<1x32x32xf32> to vector<32x32xf32>
    %cst = arith.constant dense<0.000000e+00> : vector<8x32xf32>
    %8 = tpu.matmul %5, %7, %cst {dimension_numbers = #tpu.dot_dimension_numbers<[1], [0], [0], [1], [0, 0, 1, 1], [], []>} : vector<8x32xf32>, vector<32x32xf32>, vector<8x32xf32> -> vector<8x32xf32>
    %c0_8 = arith.constant 0 : index
    %c0_9 = arith.constant 0 : index
    %c0_10 = arith.constant 0 : index
    %9 = vector.load %arg7[%c0_8, %c0_9, %c0_10] : memref<1x1x32xf32, #tpu.memory_space<vmem>>, vector<1x1x32xf32>
    %10 = vector.shape_cast %9 : vector<1x1x32xf32> to vector<1x32xf32>
    %11 = vector.broadcast %10 : vector<1x32xf32> to vector<8x32xf32>
    %12 = arith.addf %8, %11 : vector<8x32xf32>
    %cst_11 = arith.constant 0.353553385 : f32
    %13 = vector.broadcast %cst_11 : f32 to vector<8x32xf32>
    %14 = arith.mulf %12, %13 : vector<8x32xf32>
    %c0_12 = arith.constant 0 : index
    %c0_13 = arith.constant 0 : index
    %c0_14 = arith.constant 0 : index
    %15 = vector.load %arg8[%c0_12, %c0_13, %c0_14] : memref<1x32x64xf32, #tpu.memory_space<vmem>>, vector<1x32x64xf32>
    %16 = vector.shape_cast %15 : vector<1x32x64xf32> to vector<32x64xf32>
    %cst_15 = arith.constant dense<0.000000e+00> : vector<8x64xf32>
    %17 = tpu.matmul %3, %16, %cst_15 {dimension_numbers = #tpu.dot_dimension_numbers<[1], [0], [0], [1], [0, 0, 1, 1], [], []>} : vector<8x32xf32>, vector<32x64xf32>, vector<8x64xf32> -> vector<8x64xf32>
    %c0_16 = arith.constant 0 : index
    %c0_17 = arith.constant 0 : index
    %c0_18 = arith.constant 0 : index
    %18 = vector.load %arg9[%c0_16, %c0_17, %c0_18] : memref<1x1x64xf32, #tpu.memory_space<vmem>>, vector<1x1x64xf32>
    %19 = vector.shape_cast %18 : vector<1x1x64xf32> to vector<1x64xf32>
    %20 = vector.broadcast %19 : vector<1x64xf32> to vector<8x64xf32>
    %21 = arith.addf %17, %20 : vector<8x64xf32>
    %22 = vector.extract_strided_slice %21 {offsets = [0, 0], sizes = [8, 32], strides = [1, 1]} : vector<8x64xf32> to vector<8x32xf32>
    %23 = vector.extract_strided_slice %21 {offsets = [0, 32], sizes = [8, 32], strides = [1, 1]} : vector<8x64xf32> to vector<8x32xf32>
    %24 = vector.shape_cast %14 : vector<8x32xf32> to vector<1x8x32xf32>
    %25 = vector.shape_cast %22 : vector<8x32xf32> to vector<1x8x32xf32>
    %26 = vector.shape_cast %23 : vector<8x32xf32> to vector<1x8x32xf32>
    %27 = vector.extract_strided_slice %24 {offsets = [0, 0, 0], sizes = [1, 8, 8], strides = [1, 1, 1]} : vector<1x8x32xf32> to vector<1x8x8xf32>
    %28 = vector.extract_strided_slice %25 {offsets = [0, 0, 0], sizes = [1, 8, 8], strides = [1, 1, 1]} : vector<1x8x32xf32> to vector<1x8x8xf32>
    %29 = vector.extract_strided_slice %26 {offsets = [0, 0, 0], sizes = [1, 8, 8], strides = [1, 1, 1]} : vector<1x8x32xf32> to vector<1x8x8xf32>
    %cst_19 = arith.constant dense<0.000000e+00> : vector<1x8x8xf32>
    %30 = tpu.matmul %27, %28, %cst_19 {dimension_numbers = #tpu.dot_dimension_numbers<[2], [2], [1], [1], [0, 0, 0, 1, 1, 1], [0], [0]>} : vector<1x8x8xf32>, vector<1x8x8xf32>, vector<1x8x8xf32> -> vector<1x8x8xf32>
    %cst_20 = arith.constant dense<0xFF800000> : vector<1x8xf32>
    %31 = vector.multi_reduction <maximumf>, %30, %cst_20 [2] : vector<1x8x8xf32> to vector<1x8xf32>
    %32 = vector.shape_cast %31 : vector<1x8xf32> to vector<1x8x1xf32>
    %33 = vector.broadcast %32 : vector<1x8x1xf32> to vector<1x8x8xf32>
    %34 = arith.subf %30, %33 : vector<1x8x8xf32>
    %35 = math.exp %34 : vector<1x8x8xf32>
    %cst_21 = arith.constant dense<0.000000e+00> : vector<1x8xf32>
    %36 = vector.multi_reduction <add>, %35, %cst_21 [2] : vector<1x8x8xf32> to vector<1x8xf32>
    %37 = vector.shape_cast %36 : vector<1x8xf32> to vector<1x8x1xf32>
    %38 = tpu.reciprocal %37 : vector<1x8x1xf32> -> vector<1x8x1xf32>
    %39 = vector.broadcast %38 : vector<1x8x1xf32> to vector<1x8x8xf32>
    %40 = arith.mulf %35, %39 : vector<1x8x8xf32>
    %cst_22 = arith.constant dense<0.000000e+00> : vector<1x8x8xf32>
    %41 = tpu.matmul %40, %29, %cst_22 {dimension_numbers = #tpu.dot_dimension_numbers<[2], [1], [1], [2], [0, 0, 0, 1, 1, 2], [0], [0]>} : vector<1x8x8xf32>, vector<1x8x8xf32>, vector<1x8x8xf32> -> vector<1x8x8xf32>
    %42 = vector.extract_strided_slice %24 {offsets = [0, 0, 8], sizes = [1, 8, 8], strides = [1, 1, 1]} : vector<1x8x32xf32> to vector<1x8x8xf32>
    %43 = vector.extract_strided_slice %25 {offsets = [0, 0, 8], sizes = [1, 8, 8], strides = [1, 1, 1]} : vector<1x8x32xf32> to vector<1x8x8xf32>
    %44 = vector.extract_strided_slice %26 {offsets = [0, 0, 8], sizes = [1, 8, 8], strides = [1, 1, 1]} : vector<1x8x32xf32> to vector<1x8x8xf32>
    %cst_23 = arith.constant dense<0.000000e+00> : vector<1x8x8xf32>
    %45 = tpu.matmul %42, %43, %cst_23 {dimension_numbers = #tpu.dot_dimension_numbers<[2], [2], [1], [1], [0, 0, 0, 1, 1, 1], [0], [0]>} : vector<1x8x8xf32>, vector<1x8x8xf32>, vector<1x8x8xf32> -> vector<1x8x8xf32>
    %cst_24 = arith.constant dense<0xFF800000> : vector<1x8xf32>
    %46 = vector.multi_reduction <maximumf>, %45, %cst_24 [2] : vector<1x8x8xf32> to vector<1x8xf32>
    %47 = vector.shape_cast %46 : vector<1x8xf32> to vector<1x8x1xf32>
    %48 = vector.broadcast %47 : vector<1x8x1xf32> to vector<1x8x8xf32>
    %49 = arith.subf %45, %48 : vector<1x8x8xf32>
    %50 = math.exp %49 : vector<1x8x8xf32>
    %cst_25 = arith.constant dense<0.000000e+00> : vector<1x8xf32>
    %51 = vector.multi_reduction <add>, %50, %cst_25 [2] : vector<1x8x8xf32> to vector<1x8xf32>
    %52 = vector.shape_cast %51 : vector<1x8xf32> to vector<1x8x1xf32>
    %53 = tpu.reciprocal %52 : vector<1x8x1xf32> -> vector<1x8x1xf32>
    %54 = vector.broadcast %53 : vector<1x8x1xf32> to vector<1x8x8xf32>
    %55 = arith.mulf %50, %54 : vector<1x8x8xf32>
    %cst_26 = arith.constant dense<0.000000e+00> : vector<1x8x8xf32>
    %56 = tpu.matmul %55, %44, %cst_26 {dimension_numbers = #tpu.dot_dimension_numbers<[2], [1], [1], [2], [0, 0, 0, 1, 1, 2], [0], [0]>} : vector<1x8x8xf32>, vector<1x8x8xf32>, vector<1x8x8xf32> -> vector<1x8x8xf32>
    %57 = vector.extract_strided_slice %24 {offsets = [0, 0, 16], sizes = [1, 8, 8], strides = [1, 1, 1]} : vector<1x8x32xf32> to vector<1x8x8xf32>
    %58 = vector.extract_strided_slice %25 {offsets = [0, 0, 16], sizes = [1, 8, 8], strides = [1, 1, 1]} : vector<1x8x32xf32> to vector<1x8x8xf32>
    %59 = vector.extract_strided_slice %26 {offsets = [0, 0, 16], sizes = [1, 8, 8], strides = [1, 1, 1]} : vector<1x8x32xf32> to vector<1x8x8xf32>
    %cst_27 = arith.constant dense<0.000000e+00> : vector<1x8x8xf32>
    %60 = tpu.matmul %57, %58, %cst_27 {dimension_numbers = #tpu.dot_dimension_numbers<[2], [2], [1], [1], [0, 0, 0, 1, 1, 1], [0], [0]>} : vector<1x8x8xf32>, vector<1x8x8xf32>, vector<1x8x8xf32> -> vector<1x8x8xf32>
    %cst_28 = arith.constant dense<0xFF800000> : vector<1x8xf32>
    %61 = vector.multi_reduction <maximumf>, %60, %cst_28 [2] : vector<1x8x8xf32> to vector<1x8xf32>
    %62 = vector.shape_cast %61 : vector<1x8xf32> to vector<1x8x1xf32>
    %63 = vector.broadcast %62 : vector<1x8x1xf32> to vector<1x8x8xf32>
    %64 = arith.subf %60, %63 : vector<1x8x8xf32>
    %65 = math.exp %64 : vector<1x8x8xf32>
    %cst_29 = arith.constant dense<0.000000e+00> : vector<1x8xf32>
    %66 = vector.multi_reduction <add>, %65, %cst_29 [2] : vector<1x8x8xf32> to vector<1x8xf32>
    %67 = vector.shape_cast %66 : vector<1x8xf32> to vector<1x8x1xf32>
    %68 = tpu.reciprocal %67 : vector<1x8x1xf32> -> vector<1x8x1xf32>
    %69 = vector.broadcast %68 : vector<1x8x1xf32> to vector<1x8x8xf32>
    %70 = arith.mulf %65, %69 : vector<1x8x8xf32>
    %cst_30 = arith.constant dense<0.000000e+00> : vector<1x8x8xf32>
    %71 = tpu.matmul %70, %59, %cst_30 {dimension_numbers = #tpu.dot_dimension_numbers<[2], [1], [1], [2], [0, 0, 0, 1, 1, 2], [0], [0]>} : vector<1x8x8xf32>, vector<1x8x8xf32>, vector<1x8x8xf32> -> vector<1x8x8xf32>
    %72 = vector.extract_strided_slice %24 {offsets = [0, 0, 24], sizes = [1, 8, 8], strides = [1, 1, 1]} : vector<1x8x32xf32> to vector<1x8x8xf32>
    %73 = vector.extract_strided_slice %25 {offsets = [0, 0, 24], sizes = [1, 8, 8], strides = [1, 1, 1]} : vector<1x8x32xf32> to vector<1x8x8xf32>
    %74 = vector.extract_strided_slice %26 {offsets = [0, 0, 24], sizes = [1, 8, 8], strides = [1, 1, 1]} : vector<1x8x32xf32> to vector<1x8x8xf32>
    %cst_31 = arith.constant dense<0.000000e+00> : vector<1x8x8xf32>
    %75 = tpu.matmul %72, %73, %cst_31 {dimension_numbers = #tpu.dot_dimension_numbers<[2], [2], [1], [1], [0, 0, 0, 1, 1, 1], [0], [0]>} : vector<1x8x8xf32>, vector<1x8x8xf32>, vector<1x8x8xf32> -> vector<1x8x8xf32>
    %cst_32 = arith.constant dense<0xFF800000> : vector<1x8xf32>
    %76 = vector.multi_reduction <maximumf>, %75, %cst_32 [2] : vector<1x8x8xf32> to vector<1x8xf32>
    %77 = vector.shape_cast %76 : vector<1x8xf32> to vector<1x8x1xf32>
    %78 = vector.broadcast %77 : vector<1x8x1xf32> to vector<1x8x8xf32>
    %79 = arith.subf %75, %78 : vector<1x8x8xf32>
    %80 = math.exp %79 : vector<1x8x8xf32>
    %cst_33 = arith.constant dense<0.000000e+00> : vector<1x8xf32>
    %81 = vector.multi_reduction <add>, %80, %cst_33 [2] : vector<1x8x8xf32> to vector<1x8xf32>
    %82 = vector.shape_cast %81 : vector<1x8xf32> to vector<1x8x1xf32>
    %83 = tpu.reciprocal %82 : vector<1x8x1xf32> -> vector<1x8x1xf32>
    %84 = vector.broadcast %83 : vector<1x8x1xf32> to vector<1x8x8xf32>
    %85 = arith.mulf %80, %84 : vector<1x8x8xf32>
    %cst_34 = arith.constant dense<0.000000e+00> : vector<1x8x8xf32>
    %86 = tpu.matmul %85, %74, %cst_34 {dimension_numbers = #tpu.dot_dimension_numbers<[2], [1], [1], [2], [0, 0, 0, 1, 1, 2], [0], [0]>} : vector<1x8x8xf32>, vector<1x8x8xf32>, vector<1x8x8xf32> -> vector<1x8x8xf32>
    %87 = tpu.concatenate %41, %56, %71, %86 in 2 : vector<1x8x8xf32>, vector<1x8x8xf32>, vector<1x8x8xf32>, vector<1x8x8xf32> -> vector<1x8x32xf32>
    %88 = vector.shape_cast %87 : vector<1x8x32xf32> to vector<8x32xf32>
    %c0_35 = arith.constant 0 : index
    %c0_36 = arith.constant 0 : index
    %c0_37 = arith.constant 0 : index
    %89 = vector.load %arg10[%c0_35, %c0_36, %c0_37] : memref<1x32x32xf32, #tpu.memory_space<vmem>>, vector<1x32x32xf32>
    %90 = vector.shape_cast %89 : vector<1x32x32xf32> to vector<32x32xf32>
    %cst_38 = arith.constant dense<0.000000e+00> : vector<8x32xf32>
    %91 = tpu.matmul %88, %90, %cst_38 {dimension_numbers = #tpu.dot_dimension_numbers<[1], [0], [0], [1], [0, 0, 1, 1], [], []>} : vector<8x32xf32>, vector<32x32xf32>, vector<8x32xf32> -> vector<8x32xf32>
    %c0_39 = arith.constant 0 : index
    %c0_40 = arith.constant 0 : index
    %c0_41 = arith.constant 0 : index
    %92 = vector.load %arg11[%c0_39, %c0_40, %c0_41] : memref<1x1x32xf32, #tpu.memory_space<vmem>>, vector<1x1x32xf32>
    %93 = vector.shape_cast %92 : vector<1x1x32xf32> to vector<1x32xf32>
    %94 = vector.broadcast %93 : vector<1x32xf32> to vector<8x32xf32>
    %95 = arith.addf %91, %94 : vector<8x32xf32>
    %96 = arith.addf %3, %95 : vector<8x32xf32>
    %cst_42 = arith.constant dense<0.000000e+00> : vector<8xf32>
    %97 = vector.multi_reduction <add>, %96, %cst_42 [1] : vector<8x32xf32> to vector<8xf32>
    %98 = vector.shape_cast %97 : vector<8xf32> to vector<8x1xf32>
    %cst_43 = arith.constant 3.200000e+01 : f32
    %99 = vector.broadcast %cst_43 : f32 to vector<8x1xf32>
    %100 = arith.divf %98, %99 : vector<8x1xf32>
    %101 = vector.broadcast %100 : vector<8x1xf32> to vector<8x32xf32>
    %102 = arith.subf %96, %101 : vector<8x32xf32>
    %103 = arith.mulf %102, %102 : vector<8x32xf32>
    %cst_44 = arith.constant dense<0.000000e+00> : vector<8xf32>
    %104 = vector.multi_reduction <add>, %103, %cst_44 [1] : vector<8x32xf32> to vector<8xf32>
    %105 = vector.shape_cast %104 : vector<8xf32> to vector<8x1xf32>
    %cst_45 = arith.constant 3.200000e+01 : f32
    %106 = vector.broadcast %cst_45 : f32 to vector<8x1xf32>
    %107 = arith.divf %105, %106 : vector<8x1xf32>
    %108 = vector.broadcast %100 : vector<8x1xf32> to vector<8x32xf32>
    %109 = arith.subf %96, %108 : vector<8x32xf32>
    %cst_46 = arith.constant 9.99999974E-6 : f32
    %110 = vector.broadcast %cst_46 : f32 to vector<8x1xf32>
    %111 = arith.addf %107, %110 : vector<8x1xf32>
    %112 = math.rsqrt %111 : vector<8x1xf32>
    %113 = vector.broadcast %112 : vector<8x1xf32> to vector<8x32xf32>
    %114 = arith.mulf %109, %113 : vector<8x32xf32>
    %c0_47 = arith.constant 0 : index
    %c0_48 = arith.constant 0 : index
    %c0_49 = arith.constant 0 : index
    %115 = vector.load %arg16[%c0_47, %c0_48, %c0_49] : memref<1x1x32xf32, #tpu.memory_space<vmem>>, vector<1x1x32xf32>
    %116 = vector.shape_cast %115 : vector<1x1x32xf32> to vector<1x32xf32>
    %117 = vector.broadcast %116 : vector<1x32xf32> to vector<8x32xf32>
    %118 = arith.mulf %114, %117 : vector<8x32xf32>
    %c0_50 = arith.constant 0 : index
    %c0_51 = arith.constant 0 : index
    %c0_52 = arith.constant 0 : index
    %119 = vector.load %arg17[%c0_50, %c0_51, %c0_52] : memref<1x1x32xf32, #tpu.memory_space<vmem>>, vector<1x1x32xf32>
    %120 = vector.shape_cast %119 : vector<1x1x32xf32> to vector<1x32xf32>
    %121 = vector.broadcast %120 : vector<1x32xf32> to vector<8x32xf32>
    %122 = arith.addf %118, %121 : vector<8x32xf32>
    %c0_53 = arith.constant 0 : index
    %c0_54 = arith.constant 0 : index
    %c0_55 = arith.constant 0 : index
    %123 = vector.load %arg12[%c0_53, %c0_54, %c0_55] : memref<1x32x64xf32, #tpu.memory_space<vmem>>, vector<1x32x64xf32>
    %124 = vector.shape_cast %123 : vector<1x32x64xf32> to vector<32x64xf32>
    %cst_56 = arith.constant dense<0.000000e+00> : vector<8x64xf32>
    %125 = tpu.matmul %122, %124, %cst_56 {dimension_numbers = #tpu.dot_dimension_numbers<[1], [0], [0], [1], [0, 0, 1, 1], [], []>} : vector<8x32xf32>, vector<32x64xf32>, vector<8x64xf32> -> vector<8x64xf32>
    %c0_57 = arith.constant 0 : index
    %c0_58 = arith.constant 0 : index
    %c0_59 = arith.constant 0 : index
    %126 = vector.load %arg13[%c0_57, %c0_58, %c0_59] : memref<1x1x64xf32, #tpu.memory_space<vmem>>, vector<1x1x64xf32>
    %127 = vector.shape_cast %126 : vector<1x1x64xf32> to vector<1x64xf32>
    %128 = vector.broadcast %127 : vector<1x64xf32> to vector<8x64xf32>
    %129 = arith.addf %125, %128 : vector<8x64xf32>
    %cst_60 = arith.constant 0.000000e+00 : f32
    %130 = vector.broadcast %cst_60 : f32 to vector<8x64xf32>
    %131 = arith.maximumf %129, %130 : vector<8x64xf32>
    %c0_61 = arith.constant 0 : index
    %c0_62 = arith.constant 0 : index
    %c0_63 = arith.constant 0 : index
    %132 = vector.load %arg14[%c0_61, %c0_62, %c0_63] : memref<1x64x32xf32, #tpu.memory_space<vmem>>, vector<1x64x32xf32>
    %133 = vector.shape_cast %132 : vector<1x64x32xf32> to vector<64x32xf32>
    %cst_64 = arith.constant dense<0.000000e+00> : vector<8x32xf32>
    %134 = tpu.matmul %131, %133, %cst_64 {dimension_numbers = #tpu.dot_dimension_numbers<[1], [0], [0], [1], [0, 0, 1, 1], [], []>} : vector<8x64xf32>, vector<64x32xf32>, vector<8x32xf32> -> vector<8x32xf32>
    %c0_65 = arith.constant 0 : index
    %c0_66 = arith.constant 0 : index
    %c0_67 = arith.constant 0 : index
    %135 = vector.load %arg15[%c0_65, %c0_66, %c0_67] : memref<1x1x32xf32, #tpu.memory_space<vmem>>, vector<1x1x32xf32>
    %136 = vector.shape_cast %135 : vector<1x1x32xf32> to vector<1x32xf32>
    %137 = vector.broadcast %136 : vector<1x32xf32> to vector<8x32xf32>
    %138 = arith.addf %134, %137 : vector<8x32xf32>
    %139 = arith.addf %122, %138 : vector<8x32xf32>
    %cst_68 = arith.constant dense<0.000000e+00> : vector<8xf32>
    %140 = vector.multi_reduction <add>, %139, %cst_68 [1] : vector<8x32xf32> to vector<8xf32>
    %141 = vector.shape_cast %140 : vector<8xf32> to vector<8x1xf32>
    %cst_69 = arith.constant 3.200000e+01 : f32
    %142 = vector.broadcast %cst_69 : f32 to vector<8x1xf32>
    %143 = arith.divf %141, %142 : vector<8x1xf32>
    %144 = vector.broadcast %143 : vector<8x1xf32> to vector<8x32xf32>
    %145 = arith.subf %139, %144 : vector<8x32xf32>
    %146 = arith.mulf %145, %145 : vector<8x32xf32>
    %cst_70 = arith.constant dense<0.000000e+00> : vector<8xf32>
    %147 = vector.multi_reduction <add>, %146, %cst_70 [1] : vector<8x32xf32> to vector<8xf32>
    %148 = vector.shape_cast %147 : vector<8xf32> to vector<8x1xf32>
    %cst_71 = arith.constant 3.200000e+01 : f32
    %149 = vector.broadcast %cst_71 : f32 to vector<8x1xf32>
    %150 = arith.divf %148, %149 : vector<8x1xf32>
    %151 = vector.broadcast %143 : vector<8x1xf32> to vector<8x32xf32>
    %152 = arith.subf %139, %151 : vector<8x32xf32>
    %cst_72 = arith.constant 9.99999974E-6 : f32
    %153 = vector.broadcast %cst_72 : f32 to vector<8x1xf32>
    %154 = arith.addf %150, %153 : vector<8x1xf32>
    %155 = math.rsqrt %154 : vector<8x1xf32>
    %156 = vector.broadcast %155 : vector<8x1xf32> to vector<8x32xf32>
    %157 = arith.mulf %152, %156 : vector<8x32xf32>
    %c0_73 = arith.constant 0 : index
    %c0_74 = arith.constant 0 : index
    %c0_75 = arith.constant 0 : index
    %158 = vector.load %arg18[%c0_73, %c0_74, %c0_75] : memref<1x1x32xf32, #tpu.memory_space<vmem>>, vector<1x1x32xf32>
    %159 = vector.shape_cast %158 : vector<1x1x32xf32> to vector<1x32xf32>
    %160 = vector.broadcast %159 : vector<1x32xf32> to vector<8x32xf32>
    %161 = arith.mulf %157, %160 : vector<8x32xf32>
    %c0_76 = arith.constant 0 : index
    %c0_77 = arith.constant 0 : index
    %c0_78 = arith.constant 0 : index
    %162 = vector.load %arg19[%c0_76, %c0_77, %c0_78] : memref<1x1x32xf32, #tpu.memory_space<vmem>>, vector<1x1x32xf32>
    %163 = vector.shape_cast %162 : vector<1x1x32xf32> to vector<1x32xf32>
    %164 = vector.broadcast %163 : vector<1x32xf32> to vector<8x32xf32>
    %165 = arith.addf %161, %164 : vector<8x32xf32>
    %c0_79 = arith.constant 0 : index
    %c0_80 = arith.constant 0 : index
    %166 = vector.load %arg21[%c0_79, %c0_80] : memref<8x32xf32, #tpu.memory_space<vmem>>, vector<8x32xf32>
    tpu.vector_store %arg21[%c0_79, %c0_80], %165 {strides = array<i32>} : memref<8x32xf32, #tpu.memory_space<vmem>>, vector<8x32xf32>,
    %c1_i32 = arith.constant 1 : i32
    %167 = arith.cmpi eq, %arg1, %c1_i32 : i32
    %168 = arith.extui %167 : i1 to i32
    %c0_i32_81 = arith.constant 0 : i32
    %169 = arith.cmpi ne, %168, %c0_i32_81 : i32
    scf.if %169 {
      %170 = vector.shape_cast %165 : vector<8x32xf32> to vector<1x8x32xf32>
      %c0_82 = arith.constant 0 : index
      %c0_83 = arith.constant 0 : index
      %c0_84 = arith.constant 0 : index
      %171 = vector.load %arg20[%c0_82, %c0_83, %c0_84] : memref<1x8x32xf32, #tpu.memory_space<vmem>>, vector<1x8x32xf32>
      tpu.vector_store %arg20[%c0_82, %c0_83, %c0_84], %170 {strides = array<i32>} : memref<1x8x32xf32, #tpu.memory_space<vmem>>, vector<1x8x32xf32>,
    } else {
    }
    return
  }
  func.func @transform_0(%arg0: i32, %arg1: i32) -> (i32, i32, i32) {
    %c0_i32 = arith.constant 0 : i32
    %c0_i32_0 = arith.constant 0 : i32
    %c0_i32_1 = arith.constant 0 : i32
    return %arg0, %c0_i32, %c0_i32_0 : i32, i32, i32
  }
  func.func @transform_1(%arg0: i32, %arg1: i32) -> (i32, i32, i32) {
    %c0_i32 = arith.constant 0 : i32
    %c0_i32_0 = arith.constant 0 : i32
    %c0_i32_1 = arith.constant 0 : i32
    return %arg0, %c0_i32, %c0_i32_0 : i32, i32, i32
  }
  func.func @transform_2(%arg0: i32, %arg1: i32) -> (i32, i32) {
    %c0_i32 = arith.constant 0 : i32
    %c0_i32_0 = arith.constant 0 : i32
    %c0_i32_1 = arith.constant 0 : i32
    return %c0_i32, %c0_i32_0 : i32, i32
  }
  func.func @transform_3(%arg0: i32, %arg1: i32) -> (i32, i32) {
    %c0_i32 = arith.constant 0 : i32
    %c0_i32_0 = arith.constant 0 : i32
    %c0_i32_1 = arith.constant 0 : i32
    return %c0_i32, %c0_i32_0 : i32, i32
  }
  func.func @transform_4(%arg0: i32, %arg1: i32) -> (i32, i32, i32) {
    %c0_i32 = arith.constant 0 : i32
    %c0_i32_0 = arith.constant 0 : i32
    %c0_i32_1 = arith.constant 0 : i32
    return %arg1, %c0_i32, %c0_i32_0 : i32, i32, i32
  }
  func.func @transform_5(%arg0: i32, %arg1: i32) -> (i32, i32, i32) {
    %c0_i32 = arith.constant 0 : i32
    %c0_i32_0 = arith.constant 0 : i32
    %c0_i32_1 = arith.constant 0 : i32
    return %arg1, %c0_i32, %c0_i32_0 : i32, i32, i32
  }
  func.func @transform_6(%arg0: i32, %arg1: i32) -> (i32, i32, i32) {
    %c0_i32 = arith.constant 0 : i32
    %c0_i32_0 = arith.constant 0 : i32
    %c0_i32_1 = arith.constant 0 : i32
    return %arg1, %c0_i32, %c0_i32_0 : i32, i32, i32
  }
  func.func @transform_7(%arg0: i32, %arg1: i32) -> (i32, i32, i32) {
    %c0_i32 = arith.constant 0 : i32
    %c0_i32_0 = arith.constant 0 : i32
    %c0_i32_1 = arith.constant 0 : i32
    return %arg1, %c0_i32, %c0_i32_0 : i32, i32, i32
  }
  func.func @transform_8(%arg0: i32, %arg1: i32) -> (i32, i32, i32) {
    %c0_i32 = arith.constant 0 : i32
    %c0_i32_0 = arith.constant 0 : i32
    %c0_i32_1 = arith.constant 0 : i32
    return %arg1, %c0_i32, %c0_i32_0 : i32, i32, i32
  }
  func.func @transform_9(%arg0: i32, %arg1: i32) -> (i32, i32, i32) {
    %c0_i32 = arith.constant 0 : i32
    %c0_i32_0 = arith.constant 0 : i32
    %c0_i32_1 = arith.constant 0 : i32
    return %arg1, %c0_i32, %c0_i32_0 : i32, i32, i32
  }
  func.func @transform_10(%arg0: i32, %arg1: i32) -> (i32, i32, i32) {
    %c0_i32 = arith.constant 0 : i32
    %c0_i32_0 = arith.constant 0 : i32
    %c0_i32_1 = arith.constant 0 : i32
    return %arg1, %c0_i32, %c0_i32_0 : i32, i32, i32
  }
  func.func @transform_11(%arg0: i32, %arg1: i32) -> (i32, i32, i32) {
    %c0_i32 = arith.constant 0 : i32
    %c0_i32_0 = arith.constant 0 : i32
    %c0_i32_1 = arith.constant 0 : i32
    return %arg1, %c0_i32, %c0_i32_0 : i32, i32, i32
  }
  func.func @transform_12(%arg0: i32, %arg1: i32) -> (i32, i32, i32) {
    %c0_i32 = arith.constant 0 : i32
    %c0_i32_0 = arith.constant 0 : i32
    %c0_i32_1 = arith.constant 0 : i32
    return %arg1, %c0_i32, %c0_i32_0 : i32, i32, i32
  }
  func.func @transform_13(%arg0: i32, %arg1: i32) -> (i32, i32, i32) {
    %c0_i32 = arith.constant 0 : i32
    %c0_i32_0 = arith.constant 0 : i32
    %c0_i32_1 = arith.constant 0 : i32
    return %arg1, %c0_i32, %c0_i32_0 : i32, i32, i32
  }
  func.func @transform_14(%arg0: i32, %arg1: i32) -> (i32, i32, i32) {
    %c0_i32 = arith.constant 0 : i32
    %c0_i32_0 = arith.constant 0 : i32
    %c0_i32_1 = arith.constant 0 : i32
    return %arg1, %c0_i32, %c0_i32_0 : i32, i32, i32
  }
  func.func @transform_15(%arg0: i32, %arg1: i32) -> (i32, i32, i32) {
    %c0_i32 = arith.constant 0 : i32
    %c0_i32_0 = arith.constant 0 : i32
    %c0_i32_1 = arith.constant 0 : i32
    return %arg1, %c0_i32, %c0_i32_0 : i32, i32, i32
  }
  func.func @transform_16(%arg0: i32, %arg1: i32) -> (i32, i32, i32) {
    %c0_i32 = arith.constant 0 : i32
    %c0_i32_0 = arith.constant 0 : i32
    %c0_i32_1 = arith.constant 0 : i32
    return %arg1, %c0_i32, %c0_i32_0 : i32, i32, i32
  }
  func.func @transform_17(%arg0: i32, %arg1: i32) -> (i32, i32, i32) {
    %c0_i32 = arith.constant 0 : i32
    %c0_i32_0 = arith.constant 0 : i32
    %c0_i32_1 = arith.constant 0 : i32
    return %arg1, %c0_i32, %c0_i32_0 : i32, i32, i32
  }
  func.func @transform_18(%arg0: i32, %arg1: i32) -> (i32, i32, i32) {
    %c0_i32 = arith.constant 0 : i32
    %c0_i32_0 = arith.constant 0 : i32
    %c0_i32_1 = arith.constant 0 : i32
    return %arg0, %c0_i32, %c0_i32_0 : i32, i32, i32
  }
}

</mosaic_0001>

<bundles_post_ra>
// kernel: tpu_custom_call.1
= control target key start
LH: loop header
LB: loop body
LE: loop exit
PB: predicated region body
PF: predicated region fallthrough
CT: control target
= control target key end

     0   :  { %s3449_s0 = inlined_call_operand.vmem [shape: f32[2,8,256], index: 0, kind: input, shape index: {}]   ;;  %s3450_s1 = inlined_call_operand.vmem [shape: f32[2,8,32], index: 1, kind: input, shape index: {}]   ;;  %s3451_s2 = inlined_call_operand.vmem [shape: f32[256,32], index: 2, kind: input, shape index: {}]   ;;  %s3452_s3 = inlined_call_operand.vmem [shape: f32[1,32], index: 3, kind: input, shape index: {}]   ;;  %s3453_s4 = inlined_call_operand.vmem [shape: f32[2,32,32], index: 4, kind: input, shape index: {}]   ;;  %s3454_s5 = inlined_call_operand.vmem [shape: f32[2,1,32], index: 5, kind: input, shape index: {}]   ;;  %s3455_s6 = inlined_call_operand.vmem [shape: f32[2,32,64], index: 6, kind: input, shape index: {}]   ;;  %s3456_s7 = inlined_call_operand.vmem [shape: f32[2,1,64], index: 7, kind: input, shape index: {}]   ;;  %s3457_s8 = inlined_call_operand.vmem [shape: f32[2,32,32], index: 8, kind: input, shape index: {}]   ;;  %s3458_s9 = inlined_call_operand.vmem [shape: f32[2,1,32], index: 9, kind: input, shape index: {}]   ;;  %s3459_s10 = inlined_call_operand.vmem [shape: f32[2,32,64], index: 10, kind: input, shape index: {}]   ;;  %s3460_s11 = inlined_call_operand.vmem [shape: f32[2,1,64], index: 11, kind: input, shape index: {}]   ;;  %s3461_s12 = inlined_call_operand.vmem [shape: f32[2,64,32], index: 12, kind: input, shape index: {}]   ;;  %s3462_s13 = inlined_call_operand.vmem [shape: f32[2,1,32], index: 13, kind: input, shape index: {}]   ;;  %s3463_s14 = inlined_call_operand.vmem [shape: f32[2,1,32], index: 14, kind: input, shape index: {}]   ;;  %s3464_s15 = inlined_call_operand.vmem [shape: f32[2,1,32], index: 15, kind: input, shape index: {}]   ;;  %s3465_s16 = inlined_call_operand.vmem [shape: f32[2,1,32], index: 16, kind: input, shape index: {}]   ;;  %s3466_s17 = inlined_call_operand.vmem [shape: f32[2,1,32], index: 17, kind: input, shape index: {}]   ;;  %s3467_s18 = inlined_call_operand.hbm [shape: f32[2,8,32], index: 18, kind: output, shape index: {}]  }
   0x1   :  { %3485 = sst [smem:[#allocation21_spill]] %s3449_s0 }
   0x2   :  { %3486 = sst [smem:[#allocation22_spill]] %s3450_s1 }
   0x3   :  { %3487 = sst [smem:[#allocation23_spill]] %s3451_s2 }
   0x4   :  { %3488 = sst [smem:[#allocation24_spill]] %s3452_s3 }
   0x5   :  { %3489 = sst [smem:[#allocation25_spill]] %s3453_s4 }
   0x6   :  { %3490 = sst [smem:[#allocation26_spill]] %s3454_s5 }
   0x7   :  { %3491 = sst [smem:[#allocation27_spill]] %s3455_s6 }
   0x8   :  { %3492 = sst [smem:[#allocation28_spill]] %s3457_s8 }
   0x9   :  { %3493 = sst [smem:[#allocation29_spill]] %s3459_s10 }
   0xa   :  { %3494 = sst [smem:[#allocation30_spill]] %s3460_s11 }
   0xb   :  { %3495 = sst [smem:[#allocation31_spill]] %s3461_s12 }
   0xc   :  { %3496 = sst [smem:[#allocation32_spill]] %s3466_s17 }
   0xd   :  { %3497 = sst [smem:[#allocation33_spill]] %s3467_s18 }
   0xe   :  { %23 = vsyncpa [#allocation4], 0 }
   0xf   :  { %25 = vsyncpa [#allocation4 + $0x1], 0  ;;  %s2974_s27 = smov 0   ;;  %s2976_s28 = smov 0  }
  0x10   :  { %s2978_s29 = smov 0   ;;  %s2980_s30 = smov 0  }
  0x11   :  { %s2982_s0 = smov 0   ;;  %s2984_s19 = smov 0  }
  0x12   :  { %s2986_s1 = smov 0   ;;  %s2988_s20 = smov 0  }
  0x13 LB: > { %3498 = sst [smem:[#allocation6_spill]] %s2835_s27  ;;  %s2356_s21 = sadd.s32 4294967295, %s2863_s20   ;;  %s2863_s20 = sphi %s2988_s20, %s31_s20   ;;  %s2859_s1 = sphi %s2986_s1, %s3553_s1   ;;  %s2855_s19 = sphi %s2984_s19, %s3552_s19   ;;  %s2851_s0 = sphi %s2982_s0, %s3551_s0   ;;  %s2847_s30 = sphi %s2980_s30, %s3550_s30   ;;  %s2843_s29 = sphi %s2978_s29, %s3549_s29   ;;  %s2839_s28 = sphi %s2976_s28, %s3548_s28   ;;  %s2835_s27 = sphi %s2974_s27, %s3547_s27  }
  0x14   : > { %3499 = sst [smem:[#allocation7_spill]] %s2839_s28  ;;  %s2357_s22 = sadd.s32 4294967294, %s2863_s20  }
  0x15   : > { %3500 = sst [smem:[#allocation8_spill]] %s2843_s29  ;;  %s40_s2 = sadd.s32 1, %s2855_s19 }
  0x16   : > { %3501 = sst [smem:[#allocation9_spill]] %s2847_s30  ;;  %p41_p0 = scmp.ge.s32.totalorder %s40_s2, 2 }
  0x17   : > { %3502 = sst [smem:[#allocation10_spill]] %s2851_s0  ;;  %s43_s23 = sadd.s32 1, %s2859_s1 }
  0x18   : > { %3503 = sst [smem:[#allocation11_spill]] %s2855_s19  ;;  %p518_p1 = scmp.ne.s32.totalorder %s2843_s29, %s2839_s28 }
  0x19   : > { %3504 = sst [smem:[#allocation12_spill]] %s2859_s1  ;;  %p519_p2 = scmp.eq.s32.totalorder %s2356_s21, 3 }
  0x1a   : > { %3505 = sst [smem:[#allocation13_spill]] %s2863_s20  ;;  %s3555_s2 = smov (%p41_p0, %s40_s2), 0 }
  0x1b   : > { %3506 = sst [smem:[#allocation14_spill]] %s3555_s2  ;;  %s3557_s23 = smov (!%p41_p0, %s43_s23), %s2859_s1 }
  0x1c   : > { %p3023_p3 = por %p519_p2, %p518_p1  ;;  %p524_p4 = scmp.ne.s32.totalorder %s2839_s28, %s2835_s27 }
  0x1d   : > { %p45_p5 = scmp.ge.s32.totalorder %s3557_s23, 2  ;;  %p525_p6 = scmp.eq.s32.totalorder %s2357_s22, 3 }
  0x1e   : > { %s3507_s24 = scalar_select %p3023_p3, 1, 0 }
  0x1f   : > { %p2360_p7 = scmp.ge.s32.totalorder %s2863_s20, 1  ;;  %p658_p8 = scmp.lt.s32.totalorder %s2863_s20, 5 }
  0x20   : > { %3508 = sst [smem:[#allocation15_spill]] %s3507_s24  ;;  %s3559_s23 = smov (%p45_p5, %s3557_s23), 0 }
  0x21   : > { %3509 = sst [smem:[#allocation16_spill]] %s3559_s23  ;;  %p3033_p9 = por %p525_p6, %p524_p4 }
  0x22   : > { %p659_p10 = pnand %p2360_p7, %p658_p8  ;;  %s505_s26 = ssub.s32 %s2859_s1, %s3559_s23 }
  0x23   : > { %s3510_s25 = scalar_select %p3033_p9, 1, 0 }
  0x24   : > { %s508_s21 = sadd.s32 1, %s2843_s29  ;;  %p506_p11 = scmp.eq.s32.totalorder %s505_s26, 0 }
  0x25   : > { %3511 = sst [smem:[#allocation17_spill]] %s3510_s25  ;;  %662 = sbr.rel (%p659_p10) target bundleno = 2842 (0xb1a), region = 92 }
  0x26   : > { %s3041_s2 = scalar_select %p506_p11, %s2843_s29, %s508_s21  }
  0x28   : > { %3512 = sst [smem:[#allocation18_spill]] %s3041_s2 }
  0x2c   : > { %s3474_s22 = sand.u32 1, %s2839_s28   ;;  %p768_p12 = scmp.lt.s32.totalorder %s2851_s0, 1 }
  0x2d   : > { %s3047_s19 = sshll.u32 %s3474_s22, 3  ;;  %p777_p13 = scmp.lt.s32.totalorder %s2847_s30, 1 }
  0x2e   : > { %s769_s25 = scalar_select %p768_p12, %s2851_s0, 1 }
  0x2f   : > { %s3052_s27 = scalar_select %p777_p13, %s2847_s30, 1 }
  0x30   : > { %s2408_s26 = sshll.u32 %s769_s25, 4  ;;  %s2364_s21 = sshll.u32 %s769_s25, 3 }
  0x31   : > { %s3513_s2 = sld [smem:[#allocation21_spill]]  ;;  %s3514_s18 = sld [smem:[#allocation22_spill]] }
  0x32   : > { %s2409_s28 = sshll.u32 %s3052_s27, 5  ;;  %s3517_s4 = sld [smem:[#allocation25_spill]] }
  0x33   : > { %s3518_s6 = sld [smem:[#allocation27_spill]]  ;;  %s3519_s8 = sld [smem:[#allocation28_spill]] }
  0x34   : > { %s3520_s10 = sld [smem:[#allocation29_spill]]  ;;  %s2413_s29 = sshll.u32 %s3052_s27, 6 }
  0x35   : > { %s3522_s12 = sld [smem:[#allocation31_spill]] }
  0x37   : > { %s3057_s22 = scalar_lea.vmem %s3513_s2, %s2408_s26  ;;  %s3062_s24 = scalar_lea.vmem %s3514_s18, %s2364_s21 }
  0x38   : > { %3515 = sst [smem:[#allocation19_spill]] %s3062_s24  ;;  %s3072_s1 = scalar_lea.vmem %s3517_s4, %s2409_s28 }
  0x39   : > { %s3077_s26 = scalar_lea.vmem %s3518_s6, %s2409_s28  ;;  %s3086_s3 = scalar_lea.vmem %s3519_s8, %s2409_s28 }
  0x3a   : > { %s3095_s5 = scalar_lea.vmem %s3520_s10, %s2409_s28  ;;  %s819_s4 = scalar_lea.vmem %s3463_s14, %s3052_s27 }
  0x3b   : > { %s3105_s24 = scalar_lea.vmem %s3522_s12, %s2413_s29  ;;  %s822_s10 = scalar_lea.vmem %s3464_s15, %s3052_s27 }
  0x3c   : > { %3523 = sst [smem:[#allocation20_spill]] %s3105_s24  ;;  %s825_s6 = scalar_lea.vmem %s3465_s16, %s3052_s27 }
  0x3d   : > { %s3524_s29 = sld [smem:[#allocation32_spill]]  ;;  %s767_s12 = scalar_lea.vmem [#allocation3], %s3047_s19 }
  0x3e   : > { %s3525_s24 = sld [smem:[#allocation9_spill]] }
  0x43   : > { %s828_s18 = scalar_lea.vmem %s3524_s29, %s3052_s27 }
  0x44   : > { %p2375_p0 = scmp.ne.s32.totalorder %s3525_s24, 0 }
  0x45   : > { %s3526_s17 = sld [smem:[#allocation23_spill]] (!%p2375_p0)  ;;  %v834_v25 = vld [vmem:[%s3057_s22 + $0x8] sm:$0xff] (!%p2375_p0)  ;;  %v833_v49 = vld [vmem:[%s3057_s22] sm:$0xff] (!%p2375_p0)  ;;  %s3527_s2 = sld [smem:[#allocation24_spill]] (!%p2375_p0)  ;;  %vm944_vm0 = vcmask (!%p2375_p0), 261120  }
  0x46   : > { %832 = sbr.rel (%p2375_p0) target bundleno = 328 (0x148), region = 96  ;;  %938 = vmatprep.mubr.f32.mxu0 (!%p2375_p0), %v834_v25 }
  0x4b   : > { %v851_v0 = vld [vmem:[%s3526_s17 + $0x80] sm:$0xff] (!%p2375_p0)  ;;  %v852_v1 = vld [vmem:[%s3526_s17 + $0x88] sm:$0xff] (!%p2375_p0)  ;;  %v853_v5 = vld [vmem:[%s3526_s17 + $0x90] sm:$0xff] (!%p2375_p0) }
  0x4c   : > { %v835_v2 = vld [vmem:[%s3526_s17] sm:$0xff] (!%p2375_p0)  ;;  %v2597_v3 = vpack.c.bf16 (!%p2375_p0), %v852_v1, %v851_v0  ;;  %v836_v4 = vld [vmem:[%s3526_s17 + $0x8] sm:$0xff] (!%p2375_p0)  ;;  %v854_v6 = vld [vmem:[%s3526_s17 + $0x98] sm:$0xff] (!%p2375_p0) }
  0x4d   : > { %v2599_v7 = vpack.c.bf16 %v836_v4, %v835_v2  ;;  %v2601_v8 = vpack.c.bf16 %v854_v6, %v853_v5  ;;  %v837_v9 = vld [vmem:[%s3526_s17 + $0x10] sm:$0xff]  ;;  %v838_v10 = vld [vmem:[%s3526_s17 + $0x18] sm:$0xff]  ;;  %v855_v11 = vld [vmem:[%s3526_s17 + $0xa0] sm:$0xff] }
  0x4e   : > { %2598 = vmatprep.subr.bf16.mxu0 %v2597_v3  ;;  %v856_v12 = vld [vmem:[%s3526_s17 + $0xa8] sm:$0xff]  ;;  %v2603_v13 = vpack.c.bf16 %v838_v10, %v837_v9  ;;  %v839_v15 = vld [vmem:[%s3526_s17 + $0x20] sm:$0xff]  ;;  %v857_v17 = vld [vmem:[%s3526_s17 + $0xb0] sm:$0xff] }
  0x4f   : > { %2600 = vmatpush3.bf16.msra.mxu0 %v2599_v7  ;;  %v2605_v14 = vpack.c.bf16 %v856_v12, %v855_v11  ;;  %v840_v16 = vld [vmem:[%s3526_s17 + $0x28] sm:$0xff]  ;;  %v858_v18 = vld [vmem:[%s3526_s17 + $0xb8] sm:$0xff]  ;;  %v841_v21 = vld [vmem:[%s3526_s17 + $0x30] sm:$0xff] }
  0x50   : > { %2602 = vmatprep.subr.bf16.mxu0 %v2601_v8  ;;  %v2607_v19 = vpack.c.bf16 %v840_v16, %v839_v15  ;;  %v2609_v20 = vpack.c.bf16 %v858_v18, %v857_v17  ;;  %v842_v22 = vld [vmem:[%s3526_s17 + $0x38] sm:$0xff]  ;;  %v859_v23 = vld [vmem:[%s3526_s17 + $0xc0] sm:$0xff]  ;;  %v860_v24 = vld [vmem:[%s3526_s17 + $0xc8] sm:$0xff] }
  0x51   : > { %v2611_v26 = vpack.c.bf16 %v842_v22, %v841_v21  ;;  %v2613_v27 = vpack.c.bf16 %v860_v24, %v859_v23  ;;  %v843_v28 = vld [vmem:[%s3526_s17 + $0x40] sm:$0xff]  ;;  %v844_v29 = vld [vmem:[%s3526_s17 + $0x48] sm:$0xff]  ;;  %v861_v30 = vld [vmem:[%s3526_s17 + $0xd0] sm:$0xff] }
  0x52   : > { %v862_v31 = vld [vmem:[%s3526_s17 + $0xd8] sm:$0xff]  ;;  %v2615_v32 = vpack.c.bf16 %v844_v29, %v843_v28  ;;  %v845_v34 = vld [vmem:[%s3526_s17 + $0x50] sm:$0xff]  ;;  %v863_v36 = vld [vmem:[%s3526_s17 + $0xe0] sm:$0xff] }
  0x53   : > { %2604 = vmatpush3.bf16.msra.mxu0 %v2603_v13  ;;  %v2617_v33 = vpack.c.bf16 %v862_v31, %v861_v30  ;;  %v846_v35 = vld [vmem:[%s3526_s17 + $0x58] sm:$0xff]  ;;  %v864_v37 = vld [vmem:[%s3526_s17 + $0xe8] sm:$0xff]  ;;  %v847_v40 = vld [vmem:[%s3526_s17 + $0x60] sm:$0xff] }
  0x54   : > { %2606 = vmatprep.subr.bf16.mxu0 %v2605_v14  ;;  %v2619_v38 = vpack.c.bf16 %v846_v35, %v845_v34  ;;  %v2621_v39 = vpack.c.bf16 %v864_v37, %v863_v36  ;;  %v848_v41 = vld [vmem:[%s3526_s17 + $0x68] sm:$0xff]  ;;  %v865_v42 = vld [vmem:[%s3526_s17 + $0xf0] sm:$0xff]  ;;  %v866_v43 = vld [vmem:[%s3526_s17 + $0xf8] sm:$0xff] }
  0x55   : > { %v2623_v44 = vpack.c.bf16 %v848_v41, %v847_v40  ;;  %v2625_v45 = vpack.c.bf16 %v866_v43, %v865_v42  ;;  %v849_v46 = vld [vmem:[%s3526_s17 + $0x70] sm:$0xff]  ;;  %v850_v47 = vld [vmem:[%s3526_s17 + $0x78] sm:$0xff]  ;;  %v2376_v51 = vld [vmem:[%s3527_s2] ss:$0 sm:$0xff] }
  0x56   : > { %v2627_v48 = vpack.c.bf16 %v850_v47, %v849_v46 }
  0x57   : > { %2608 = vmatpush3.bf16.msra.mxu0 %v2607_v19 }
  0x58   : > { %2610 = vmatprep.subr.bf16.mxu0 %v2609_v20 }
  0x5b   : > { %2612 = vmatpush3.bf16.msra.mxu0 %v2611_v26 }
  0x5c   : > { %2614 = vmatprep.subr.bf16.mxu0 %v2613_v27 }
  0x5f   : > { %2616 = vmatpush3.bf16.msra.mxu0 %v2615_v32 }
  0x60   : > { %2618 = vmatprep.subr.bf16.mxu0 %v2617_v33 }
  0x63   : > { %2620 = vmatpush3.bf16.msra.mxu0 %v2619_v38 }
  0x64   : > { %2622 = vmatprep.subr.bf16.mxu0 %v2621_v39 }
  0x67   : > { %2624 = vmatpush3.bf16.msra.mxu0 %v2623_v44 }
  0x68   : > { %2626 = vmatprep.subr.bf16.mxu0 %v2625_v45 }
  0x6b   : > { %2628 = vmatpush3.bf16.msra.mxu0 %v2627_v48 }
  0x6e   : > { %939 = vmatmul.mubr.f32.vlgmr.msra.gmra.mrb[0].mxu0 %v833_v49 }
 0x141   : > { %v2446_v50 = vpop.f32.mrb[0].mxu0 }
 0x142   : > { %v2447_v52 = vpop.f32.mrb[1].mxu0 }
 0x143   : > { %v2448_v53 = vadd.f32 %v2447_v52, %v2446_v50 }
 0x145   : > { %v941_v54 = vadd.f32 %v2448_v53, %v2376_v51 }
 0x147   : > { %945 = vst.msk [vmem:[#allocation2] sm:$0xff] %vm944_vm0, %v941_v54 }
 0x148 PF: > { %v948_v55 = vld [vmem:[%s3072_s1] sm:$0xff]  ;;  %v949_v56 = vld [vmem:[%s3072_s1 + $0x8] sm:$0xff]  ;;  %v950_v57 = vld [vmem:[%s3072_s1 + $0x10] sm:$0xff]  ;;  %s3528_s22 = sld [smem:[#allocation19_spill]]  ;;  %v2865_v58 = vmov 0.0|0.0   ;;  %vm2866_vm1 = vmmov 0   ;;  %s3531_s29 = scalar_lea.vmem %s3456_s7, %s3052_s27 }
 0x149   : > { %2629 = vmatprep.subr.bf16.mxu1 %v2865_v58  ;;  %v2630_v59 = vpack.c.bf16 %v949_v56, %v948_v55  ;;  %v951_v60 = vld [vmem:[%s3072_s1 + $0x18] sm:$0xff]  ;;  %v2867_v61 = vmov 0.0   ;;  %v1034_v63 = vld [vmem:[%s3077_s26] sm:$0xff]  ;;  %v1035_v0 = vld [vmem:[%s3077_s26 + $0x8] sm:$0xff]  ;;  %vm959_vm2 = vcmask 261120   ;;  %s3529_s11 = sld [smem:[#allocation26_spill]] }
 0x14a   : > { %2502 = vmatprep.mubr.msk.f32.mxu1 %vm2866_vm1, %v2867_v61  ;;  %2516 = vmatprep.subr.mxu0 %v2867_v61  ;;  %v2633_v62 = vpack.c.bf16 %v951_v60, %v950_v57  ;;  %v2636_v2 = vpack.c.bf16 %v1035_v0, %v1034_v63  ;;  %v1036_v3 = vld [vmem:[%s3077_s26 + $0x10] sm:$0xff]  ;;  %v1037_v4 = vld [vmem:[%s3077_s26 + $0x18] sm:$0xff]  ;;  %v2379_v10 = vld [vmem:[%s3531_s29] ss:$0 sm:$0xff]  ;;  %vm1118_vm3 = vcmask 64512   ;;  %s2868_s30 = smov 112  }
 0x14b   : > { %2518 = vmatprep.mubr.msk.f32.mxu0 %vm2866_vm1, %v2867_v61  ;;  %2631 = vmatpush3.bf16.msra.mxu1 %v2630_v59  ;;  %v2639_v5 = vpack.c.bf16 %v1037_v4, %v1036_v3  ;;  %s2869_s8 = smov 120   ;;  %s2870_s21 = smov 104   ;;  %vm1790_vm4 = vcmask 130048   ;;  %vm1792_vm5 = vcmask 195584   ;;  %vm2009_vm6 = vcmask 523264  }
 0x14c   : > { %2632 = vmatprep.subr.bf16.mxu1 %v2865_v58  ;;  %s2871_s0 = smov 96   ;;  %s2872_s28 = smov 80  }
 0x14d   : > { %s2873_s25 = smov 72   ;;  %s2874_s2 = smov 88  }
 0x14e   : > { %v947_v1 = vld [vmem:[%s3528_s22] sm:$0xff]  ;;  %s2875_s22 = smov 8   ;;  %s2876_s1 = smov 16  }
 0x14f   : > { %2634 = vmatpush3.bf16.msra.mxu1 %v2633_v62  ;;  %v3251_v6 = vld [vmem:[#allocation2] sm:$0xff]  ;;  %s3530_s23 = scalar_lea.vmem %s3529_s11, %s3052_s27  ;;  %s2877_s26 = smov 24  }
 0x150   : > { %2635 = vmatprep.subr.bf16.mxu1 %v2865_v58  ;;  %v2377_v9 = vld [vmem:[%s3530_s23] ss:$0 sm:$0xff]  ;;  %s3532_s23 = scalar_lea.vmem %s3458_s9, %s3052_s27  ;;  %s3533_s24 = sld [smem:[#allocation20_spill]] }
 0x151   : > { %s3538_s11 = sld [smem:[#allocation9_spill]] }
 0x152   : > { %2503 = vmatmul.mubr.msk.f32.vlgmr.msra.gmra.mrb[0].mxu1 %vm959_vm2, %v947_v1 }
 0x153   : > { %2637 = vmatpush3.bf16.msra.mxu1 %v2636_v2  ;;  %2513 = vmatprep.mubr.msk.f32.mxu1 %vm2866_vm1, %v2867_v61 }
 0x154   : > { %2638 = vmatprep.subr.bf16.mxu1 %v2865_v58 }
 0x157   : > { %2640 = vmatpush3.bf16.msra.mxu1 %v2639_v5  ;;  %p2403_p1 = scmp.ne.s32.totalorder %s3538_s11, 1 }
 0x158   : > { %2521 = vmatprep.subr.mxu1 %v2867_v61 }
 0x15a   : > { %2514 = vmatmul.mubr.msk.f32.vlgmr.msra.gmra.mrb[2].mxu1 %vm959_vm2, %v3251_v6 }
 0x15b   : > { %2523 = vmatprep.mubr.msk.f32.mxu1 %vm2866_vm1, %v2867_v61 }
 0x225   : > { %v1029_v7 = vpop.f32.mrb[0].mxu1 }
 0x226   : > { %v2504_v8 = vpop.f32.mrb[1].mxu1  ;;  %v1030_v12 = vadd.f32 %v2377_v9, %v1029_v7 }
 0x228   : > { %v1033_v15 = vmul.f32 0.35355338, %v1030_v12  ;;  %v1795_v12 = vld [vmem:[%s3086_s3 + $0x8] sm:$0xff] }
 0x22d   : > { %v1114_v11 = vpop.f32.mrb[2].mxu1 }
 0x22e   : > { %v3268_v13 = vadd.f32 %v2379_v10, %v1114_v11  ;;  %v2515_v14 = vpop.f32.mrb[3].mxu1  ;;  %v1794_v11 = vld [vmem:[%s3086_s3] sm:$0xff] }
 0x22f   : > { %v1796_v14 = vld [vmem:[%s3086_s3 + $0x10] sm:$0xff] }
 0x230   : > { %1449 = vrot.lane.b32.xlu1 %v3268_v13, %s2868_s30  ;;  %1284 = vrot.lane.b32.xlu0 %v3268_v13, %s2869_s8 }
 0x231   : > { %2517 = vmatpush3.xpose.msk.msra.mxu0 %vm1118_vm3, %v3268_v13 }
 0x232   : > { %2526 = vmatprep.subr.mxu0 %v2867_v61 }
 0x234   : > { %2519 = vmatmul.mubr.msk.f32.vlgmr.msra.gmra.mrb[0].mxu0 %vm1118_vm3, %v1033_v15  ;;  %1447 = vrot.lane.b32.xlu1 %v1033_v15, %s2868_s30 }
 0x235   : > { %1282 = vrot.lane.b32.xlu0 %v1033_v15, %s2869_s8  ;;  %2528 = vmatprep.mubr.msk.f32.mxu0 %vm2866_vm1, %v2867_v61 }
 0x238   : > { %1612 = vrot.lane.b32.xlu1 %v1033_v15, %s2870_s21  ;;  %v1797_v15 = vld [vmem:[%s3086_s3 + $0x18] sm:$0xff] }
 0x239   : > { %1614 = vrot.lane.b32.xlu0 %v3268_v13, %s2870_s21 }
 0x2a2   : > { %v1285_v16 = vpop.permute.xlu0 %1284  ;;  %v1450_v17 = vpop.permute.xlu1 %1449 }
 0x2a3   : > { %2527 = vmatpush3.xpose.msk.msra.mxu0 %vm1118_vm3, %v1285_v16  ;;  %v2645_v16 = vpack.c.bf16 %v1797_v15, %v1796_v14 }
 0x2a4   : > { %2536 = vmatprep.subr.mxu0 %v2867_v61 }
 0x2a6   : > { %v1448_v19 = vpop.permute.xlu1 %1447 }
 0x2a7   : > { %v1283_v18 = vpop.permute.xlu0 %1282 }
 0x2a8   : > { %2529 = vmatmul.mubr.msk.f32.vlgmr.msra.gmra.mrb[2].mxu0 %vm1118_vm3, %v1283_v18 }
 0x2a9   : > { %2537 = vmatpush3.xpose.msk.msra.mxu0 %vm1118_vm3, %v1450_v17  ;;  %2538 = vmatprep.mubr.msk.f32.mxu0 %vm2866_vm1, %v2867_v61 }
 0x2aa   : > { %2546 = vmatprep.subr.mxu0 %v2867_v61  ;;  %v1613_v21 = vpop.permute.xlu1 %1612 }
 0x2ab   : > { %v1615_v20 = vpop.permute.xlu0 %1614 }
 0x2ac   : > { %2539 = vmatmul.mubr.msk.f32.vlgmr.msra.gmra.mrb[4].mxu0 %vm1118_vm3, %v1448_v19 }
 0x2ad   : > { %2547 = vmatpush3.xpose.msk.msra.mxu0 %vm1118_vm3, %v1615_v20  ;;  %2548 = vmatprep.mubr.msk.f32.mxu0 %vm2866_vm1, %v2867_v61 }
 0x2ae   : > { %2641 = vmatprep.subr.bf16.mxu0 %v2865_v58 }
 0x2b0   : > { %2549 = vmatmul.mubr.msk.f32.vlgmr.msra.gmra.mrb[6].mxu0 %vm1118_vm3, %v1613_v21 }
 0x2b1   : > { %2564 = vmatprep.mubr.msk.f32.mxu0 %vm2866_vm1, %v2867_v61 }
 0x307   : > { %v1191_v22 = vpop.f32.mrb[0].mxu0 }
 0x308   : > { %v2520_v23 = vpop.f32.mrb[1].mxu0  ;;  %v1195_v24 = vsel %vm1118_vm3, %v1191_v22, -inf }
 0x309   : > { %1196 = vmax.xlane.f32.xlu0 %v1195_v24 }
 0x37b   : > { %v1356_v25 = vpop.f32.mrb[2].mxu0 }
 0x37c   : > { %v2530_v26 = vpop.f32.mrb[3].mxu0  ;;  %v1360_v27 = vsel %vm1118_vm3, %v1356_v25, -inf }
 0x37d   : > { %1361 = vmax.xlane.f32.xlu1 %v1360_v27 }
 0x37f   : > { %v1521_v28 = vpop.f32.mrb[4].mxu0 }
 0x380   : > { %v2540_v29 = vpop.f32.mrb[5].mxu0  ;;  %v1525_v30 = vsel %vm1118_vm3, %v1521_v28, -inf }
 0x381   : > { %1526 = vmax.xlane.f32.xlu0 %v1525_v30  ;;  %v2393_v29 = vld [vmem:[%s3532_s23] ss:$0 sm:$0xff] }
 0x383   : > { %v1686_v31 = vpop.f32.mrb[6].mxu0 }
 0x384   : > { %v2550_v32 = vpop.f32.mrb[7].mxu0  ;;  %v1690_v33 = vsel %vm1118_vm3, %v1686_v31, -inf }
 0x385   : > { %1691 = vmax.xlane.f32.xlu0 %v1690_v33 }
 0x38e   : > { %1206 = vrot.lane.b32.xlu1 %v3268_v13, %s2871_s0  ;;  %s3534_s0 = sld [smem:[#allocation30_spill]] }
 0x396   : > { %v1197_v34 = vpop.xlane.xlu0 %1196 }
 0x397   : > { %v1198_v35 = vsub.f32 %v1191_v22, %v1197_v34 }
 0x399   : > { %v1199_v36 = vmul.f32 1.442695, %v1198_v35 }
 0x39b   : > { %2749 = vpow2.f32 %v1199_v36 }
 0x3a5   : > { %v2750_v37 = vpop.eup %2749 }
 0x3a6   : > { %v1201_v38 = vsel %vm1118_vm3, %v2750_v37, 0.0 }
 0x3b2   : > { %1202 = vadd.xlane.f32.xlu1 %v1201_v38 }
 0x40a   : > { %v1362_v39 = vpop.xlane.xlu1 %1361 }
 0x40b   : > { %v1363_v40 = vsub.f32 %v1356_v25, %v1362_v39  ;;  %v1909_v39 = vld [vmem:[%s3095_s5] sm:$0xff] }
 0x40d   : > { %v1364_v41 = vmul.f32 1.442695, %v1363_v40  ;;  %v1910_v40 = vld [vmem:[%s3095_s5 + $0x8] sm:$0xff] }
 0x40e   : > { %v1207_v42 = vpop.permute.xlu1 %1206  ;;  %v1527_v43 = vpop.xlane.xlu0 %1526 }
 0x40f   : > { %2751 = vpow2.f32 %v1364_v41  ;;  %v1528_v44 = vsub.f32 %v1521_v28, %v1527_v43  ;;  %2522 = vmatpush3.msra.mxu1 %v1207_v42  ;;  %v2648_v41 = vpack.c.bf16 %v1910_v40, %v1909_v39  ;;  %v1912_v42 = vld [vmem:[%s3095_s5 + $0x18] sm:$0xff] }
 0x410   : > { %2531 = vmatprep.subr.mxu1 %v2867_v61 }
 0x411   : > { %v1529_v45 = vmul.f32 1.442695, %v1528_v44  ;;  %v1994_v44 = vld [vmem:[%s3533_s24] sm:$0xff] }
 0x412   : > { %v1692_v46 = vpop.xlane.xlu0 %1691 }
 0x413   : > { %2753 = vpow2.f32 %v1529_v45  ;;  %v1693_v47 = vsub.f32 %v1686_v31, %v1692_v46  ;;  %v1995_v45 = vld [vmem:[%s3533_s24 + $0x8] sm:$0xff]  ;;  %v1996_v46 = vld [vmem:[%s3533_s24 + $0x10] sm:$0xff] }
 0x415   : > { %v1694_v48 = vmul.f32 1.442695, %v1693_v47  ;;  %v2654_v47 = vpack.c.bf16 %v1995_v45, %v1994_v44 }
 0x417   : > { %2755 = vpow2.f32 %v1694_v48  ;;  %v1997_v48 = vld [vmem:[%s3533_s24 + $0x18] sm:$0xff] }
 0x419   : > { %v2752_v49 = vpop.eup %2751 }
 0x41a   : > { %v1366_v50 = vsel %vm1118_vm3, %v2752_v49, 0.0 }
 0x41b   : > { %1367 = vadd.xlane.f32.xlu0 %v1366_v50  ;;  %v1998_v50 = vld [vmem:[%s3533_s24 + $0x20] sm:$0xff] }
 0x41d   : > { %v2754_v51 = vpop.eup %2753 }
 0x41e   : > { %v1531_v52 = vsel %vm1118_vm3, %v2754_v51, 0.0 }
 0x41f   : > { %1532 = vadd.xlane.f32.xlu1 %v1531_v52 }
 0x421   : > { %v2756_v53 = vpop.eup %2755 }
 0x422   : > { %v1696_v54 = vsel %vm1118_vm3, %v2756_v53, 0.0 }
 0x423   : > { %1697 = vadd.xlane.f32.xlu0 %v1696_v54 }
 0x430   : > { %1536 = vrot.lane.b32.xlu1 %v3268_v13, %s2872_s28  ;;  %s3535_s28 = scalar_lea.vmem %s3534_s0, %s3052_s27 }
 0x434   : > { %1701 = vrot.lane.b32.xlu1 %v3268_v13, %s2873_s25  ;;  %s3536_s25 = scalar_lea.vmem %s3462_s13, %s3052_s27 }
 0x439   : > { %1371 = vrot.lane.b32.xlu0 %v3268_v13, %s2874_s2  ;;  %v2642_v13 = vpack.c.bf16 %v1795_v12, %v1794_v11 }
 0x43b   : > { %2643 = vmatpush3.bf16.msra.mxu0 %v2642_v13 }
 0x43c   : > { %2644 = vmatprep.subr.bf16.mxu0 %v2865_v58 }
 0x43f   : > { %v1203_v55 = vpop.xlane.xlu1 %1202  ;;  %2646 = vmatpush3.bf16.msra.mxu0 %v2645_v16 }
 0x440   : > { %2757 = vrcp.f32 %v1203_v55  ;;  %2653 = vmatprep.subr.bf16.mxu0 %v2865_v58 }
 0x44a   : > { %v2758_v56 = vpop.eup %2757 }
 0x44b   : > { %v1205_v57 = vmul.f32 %v2758_v56, %v2750_v37 }
 0x44d   : > { %2524 = vmatmul.mubr.msk.f32.vlgmr.msra.gmra.mrb[4].mxu1 %vm1118_vm3, %v1205_v57  ;;  %v2395_v57 = vld [vmem:[%s819_s4] ss:$0 sm:$0xff] }
 0x44e   : > { %2533 = vmatprep.mubr.msk.f32.mxu1 %vm2866_vm1, %v2867_v61 }
 0x4a8   : > { %v1368_v59 = vpop.xlane.xlu0 %1367 }
 0x4a9   : > { %2759 = vrcp.f32 %v1368_v59 }
 0x4ac   : > { %v1533_v60 = vpop.xlane.xlu1 %1532 }
 0x4ad   : > { %2761 = vrcp.f32 %v1533_v60  ;;  %v2396_v60 = vld [vmem:[%s822_s10] ss:$0 sm:$0xff] }
 0x4b0   : > { %v1698_v62 = vpop.xlane.xlu0 %1697  ;;  %v1537_v1 = vpop.permute.xlu1 %1536 }
 0x4b1   : > { %2763 = vrcp.f32 %v1698_v62 }
 0x4b3   : > { %v2760_v63 = vpop.eup %2759 }
 0x4b4   : > { %v1370_v0 = vmul.f32 %v2760_v63, %v2752_v49  ;;  %v1372_v2 = vpop.permute.xlu0 %1371  ;;  %v1702_v5 = vpop.permute.xlu1 %1701  ;;  %v2657_v49 = vpack.c.bf16 %v1997_v48, %v1996_v46  ;;  %v2000_v63 = vld [vmem:[%s3533_s24 + $0x30] sm:$0xff] }
 0x4b5   : > { %2532 = vmatpush3.msra.mxu1 %v1372_v2  ;;  %v2397_v2 = vld [vmem:[%s3535_s28] ss:$0 sm:$0xff] }
 0x4b6   : > { %2534 = vmatmul.mubr.msk.f32.vlgmr.msra.gmra.mrb[6].mxu1 %vm1118_vm3, %v1370_v0  ;;  %2541 = vmatprep.subr.mxu1 %v2867_v61  ;;  %v2001_v0 = vld [vmem:[%s3533_s24 + $0x38] sm:$0xff] }
 0x4b7   : > { %v2762_v3 = vpop.eup %2761  ;;  %2542 = vmatpush3.msra.mxu1 %v1537_v1  ;;  %2543 = vmatprep.mubr.msk.f32.mxu1 %vm2866_vm1, %v2867_v61  ;;  %v2663_v1 = vpack.c.bf16 %v2001_v0, %v2000_v63 }
 0x4b8   : > { %v1535_v4 = vmul.f32 %v2762_v3, %v2754_v51  ;;  %2551 = vmatprep.subr.mxu1 %v2867_v61  ;;  %v1999_v51 = vld [vmem:[%s3533_s24 + $0x28] sm:$0xff] }
 0x4b9   : > { %v2660_v52 = vpack.c.bf16 %v1999_v51, %v1998_v50 }
 0x4ba   : > { %2544 = vmatmul.mubr.msk.f32.vlgmr.msra.gmra.mrb[8].mxu1 %vm1118_vm3, %v1535_v4 }
 0x4bb   : > { %v2764_v7 = vpop.eup %2763  ;;  %2552 = vmatpush3.msra.mxu1 %v1702_v5  ;;  %2553 = vmatprep.mubr.msk.f32.mxu1 %vm2866_vm1, %v2867_v61 }
 0x4bc   : > { %v1700_v8 = vmul.f32 %v2764_v7, %v2756_v53  ;;  %2647 = vmatprep.subr.bf16.mxu1 %v2865_v58 }
 0x4be   : > { %2554 = vmatmul.mubr.msk.f32.vlgmr.msra.gmra.mrb[10].mxu1 %vm1118_vm3, %v1700_v8  ;;  %v2399_v8 = vld [vmem:[%s3536_s25] ss:$0 sm:$0xff] }
 0x4bf   : > { %2575 = vmatprep.mubr.msk.f32.mxu1 %vm2866_vm1, %v2867_v61  ;;  %2649 = vmatpush3.bf16.msra.mxu1 %v2648_v41 }
 0x4c0   : > { %2650 = vmatprep.subr.bf16.mxu1 %v2865_v58 }
 0x520   : > { %v1278_v9 = vpop.f32.mrb[4].mxu1 }
 0x521   : > { %v2525_v10 = vpop.f32.mrb[5].mxu1 }
 0x589   : > { %v1443_v17 = vpop.f32.mrb[6].mxu1 }
 0x58a   : > { %1778 = vrot.lane.b32.xlu0 %v1443_v17, %s2875_s22  ;;  %v2535_v18 = vpop.f32.mrb[7].mxu1 }
 0x58d   : > { %v1608_v19 = vpop.f32.mrb[8].mxu1 }
 0x58e   : > { %1782 = vrot.lane.b32.xlu1 %v1608_v19, %s2876_s1  ;;  %v2545_v20 = vpop.f32.mrb[9].mxu1 }
 0x591   : > { %v1773_v21 = vpop.f32.mrb[10].mxu1 }
 0x592   : > { %1786 = vrot.lane.b32.xlu0 %v1773_v21, %s2877_s26  ;;  %v2555_v22 = vpop.f32.mrb[11].mxu1 }
 0x5fc   : > { %v1779_v23 = vpop.permute.xlu0 %1778 }
 0x5fd   : > { %v1789_v25 = vsel %vm1118_vm3, %v1278_v9, %v1779_v23  ;;  %v2401_v23 = vld [vmem:[%s825_s6] ss:$0 sm:$0xff] }
 0x600   : > { %v1783_v24 = vpop.permute.xlu1 %1782 }
 0x601   : > { %v1791_v26 = vsel %vm1790_vm4, %v1789_v25, %v1783_v24  ;;  %v2402_v25 = vld [vmem:[%s828_s18] ss:$0 sm:$0xff] }
 0x604   : > { %v1787_v27 = vpop.permute.xlu0 %1786 }
 0x605   : > { %v1793_v28 = vsel %vm1792_vm5, %v1791_v26, %v1787_v27 }
 0x606   : > { %2565 = vmatmul.mubr.msk.f32.vlgmr.msra.gmra.mrb[8].mxu0 %vm959_vm2, %v1793_v28 }
 0x607   : > { %2594 = vmatprep.mubr.msk.f32.mxu0 %vm2866_vm1, %v2867_v61  ;;  %2655 = vmatpush3.bf16.msra.mxu0 %v2654_v47 }
 0x608   : > { %2656 = vmatprep.subr.bf16.mxu0 %v2865_v58 }
 0x60b   : > { %2658 = vmatpush3.bf16.msra.mxu0 %v2657_v49 }
 0x60c   : > { %2659 = vmatprep.subr.bf16.mxu0 %v2865_v58 }
 0x60f   : > { %2661 = vmatpush3.bf16.msra.mxu0 %v2660_v52 }
 0x610   : > { %2662 = vmatprep.subr.bf16.mxu0 %v2865_v58 }
 0x613   : > { %2664 = vmatpush3.bf16.msra.mxu0 %v2663_v1 }
 0x6d9   : > { %v1874_v30 = vpop.f32.mrb[8].mxu0 }
 0x6da   : > { %v1875_v31 = vadd.f32 %v2393_v29, %v1874_v30  ;;  %v2566_v32 = vpop.f32.mrb[9].mxu0 }
 0x6dc   : > { %v1878_v33 = vadd.f32 %v1875_v31, %v3251_v6  ;;  %v1911_v6 = vld [vmem:[%s3095_s5 + $0x10] sm:$0xff] }
 0x6dd   : > { %v2651_v43 = vpack.c.bf16 %v1912_v42, %v1911_v6 }
 0x6de   : > { %v1879_v34 = vsel %vm959_vm2, %v1878_v33, 0.0 }
 0x6df   : > { %1880 = vadd.xlane.f32.xlu1 %v1879_v34  ;;  %2652 = vmatpush3.bf16.msra.mxu1 %v2651_v43 }
 0x76c   : > { %v1881_v35 = vpop.xlane.xlu1 %1880 }
 0x76d   : > { %v1883_v36 = vmul.f32 0.03125, %v1881_v35 }
 0x76f   : > { %v1884_v61 = vsub.f32 %v1878_v33, %v1883_v36 }
 0x771   : > { %v1885_v37 = vmul.f32 %v1884_v61, %v1884_v61 }
 0x773   : > { %v1886_v38 = vsel %vm959_vm2, %v1885_v37, 0.0 }
 0x774   : > { %1887 = vadd.xlane.f32.xlu0 %v1886_v38 }
 0x801   : > { %v1888_v53 = vpop.xlane.xlu0 %1887 }
 0x802   : > { %v1889_v54 = vmul.f32 0.03125, %v1888_v53 }
 0x804   : > { %v1890_v55 = vadd.f32 1e-05, %v1889_v54 }
 0x806   : > { %2765 = vrsqrt.f32 %v1890_v55 }
 0x810   : > { %v2766_v56 = vpop.eup %2765 }
 0x811   : > { %v1892_v59 = vmul.f32 %v2766_v56, %v1884_v61 }
 0x813   : > { %v1900_v62 = vmul.f32 %v2395_v57, %v1892_v59 }
 0x815   : > { %v1908_v58 = vadd.f32 %v2396_v60, %v1900_v62 }
 0x817   : > { %2576 = vmatmul.mubr.msk.f32.vlgmr.msra.gmra.mrb[12].mxu1 %vm959_vm2, %v1908_v58 }
 0x8ea   : > { %v1989_v3 = vpop.f32.mrb[12].mxu1 }
 0x8eb   : > { %v1990_v4 = vadd.f32 %v2397_v2, %v1989_v3  ;;  %v2577_v5 = vpop.f32.mrb[13].mxu1 }
 0x8ed   : > { %v1993_v7 = vmax.f32 %v1990_v4, 0.0 }
 0x8ef   : > { %2595 = vmatmul.mubr.msk.f32.vlgmr.msra.gmra.mrb[10].mxu0 %vm2009_vm6, %v1993_v7 }
 0x9c2   : > { %v2079_v9 = vpop.f32.mrb[10].mxu0 }
 0x9c3   : > { %v2080_v10 = vadd.f32 %v2399_v8, %v2079_v9  ;;  %v2596_v11 = vpop.f32.mrb[11].mxu0 }
 0x9c5   : > { %v2083_v12 = vadd.f32 %v2080_v10, %v1908_v58 }
 0x9c7   : > { %v2084_v13 = vsel %vm959_vm2, %v2083_v12, 0.0 }
 0x9c8   : > { %2085 = vadd.xlane.f32.xlu0 %v2084_v13 }
 0xa55   : > { %v2086_v14 = vpop.xlane.xlu0 %2085 }
 0xa56   : > { %v2087_v15 = vmul.f32 0.03125, %v2086_v14 }
 0xa58   : > { %v2088_v16 = vsub.f32 %v2083_v12, %v2087_v15 }
 0xa5a   : > { %v2089_v17 = vmul.f32 %v2088_v16, %v2088_v16 }
 0xa5c   : > { %v2090_v18 = vsel %vm959_vm2, %v2089_v17, 0.0 }
 0xa5d   : > { %2091 = vadd.xlane.f32.xlu1 %v2090_v18 }
 0xaea   : > { %v2092_v19 = vpop.xlane.xlu1 %2091 }
 0xaeb   : > { %v2093_v20 = vmul.f32 0.03125, %v2092_v19 }
 0xaed   : > { %v2094_v21 = vadd.f32 1e-05, %v2093_v20 }
 0xaef   : > { %2767 = vrsqrt.f32 %v2094_v21 }
 0xaf9   : > { %v2768_v22 = vpop.eup %2767 }
 0xafa   : > { %v2096_v24 = vmul.f32 %v2768_v22, %v2088_v16  ;;  %2117 = sbr.rel (%p2403_p1) target bundleno = 2817 (0xb01), region = 100 }
 0xafc   : > { %v2104_v26 = vmul.f32 %v2401_v23, %v2096_v24 }
 0xafe   : > { %v2112_v27 = vadd.f32 %v2402_v25, %v2104_v26 }
 0xb00   : > { %2113 = vst.msk [vmem:[#allocation2] sm:$0xff] %vm959_vm2, %v2112_v27  ;;  %2118 = vst.msk [vmem:[%s767_s12] sm:$0xff] (!%p2403_p1), %vm959_vm2, %v2112_v27 }
 0xb01 PF: > { %s3539_s23 = sld [smem:[#allocation10_spill]]  ;;  %s3540_s6 = sld [smem:[#allocation7_spill]] }
 0xb02   : > { %s3542_s18 = sld [smem:[#allocation33_spill]]  ;;  %s2133_s30 = sshll.u32 %s767_s12, 4  ;;  %s2134_s30 = int_to_ptr.vmem [resolvable:$true] %s2133_s30 }
 0xb03   : > { %s2769_s0 = scalar_lea.vmem %s2134_s30, 128  ;;  %s2878_s28 = smov [#allocation3]  }
 0xb04   : > { %p2770_p2 = scmp.ne.s32.totalorder %s2134_s30, %s2769_s0  ;;  %s2773_s10 = sshll.u32 %s2878_s28, 4  ;;  %s2774_s10 = int_to_ptr.vmem [resolvable:$false] %s2773_s10 }
 0xb05   : > { %s2775_s4 = scalar_lea.vmem %s2774_s10, 256  ;;  %p2776_p6 = scmp.lt.s32.totalorder %s2134_s30, %s2774_s10 }
 0xb06   : > { %p2771_p4 = pnand %p2770_p2, %p3023_p3  ;;  %p2777_p7 = scmp.lt.s32.totalorder %s2775_s4, %s2769_s0 }
 0xb07   : > { %s2405_s5 = sshll.u32 %s3539_s23, 7  ;;  %s3543_s8 = sand.u32 1, %s3540_s6  }
 0xb08   : > { %s3398_s29 = scalar_lea.hbm %s3542_s18, %s2405_s5  ;;  %s2120_s21 = scalar_lea.sflag [#allocation4], %s3543_s8 }
 0xb09   : > { %p2772_p5 = pneg %p2771_p4  ;;  %p2778_p8 = por %p2777_p7, %p2776_p6 }
 0xb0b   : > { %p2779_p10 = pnand %p2778_p8, %p2772_p5 }
 0xb0d   : > { %2782 = shalt.err (!%p2779_p10)
}
 0xb0e   : > { %s2783_s12 = scalar_lea.hbm %s3398_s29, 128  ;;  %s2787_s2 = scalar_lea.hbm %s3542_s18, 256 }
 0xb0f   : > { %p2784_p11 = scmp.ne.s32.totalorder %s3398_s29, %s2783_s12  ;;  %p2788_p0 = scmp.lt.u32.totalorder %s3398_s29, %s3542_s18 }
 0xb10   : > { %p2789_p1 = scmp.lt.u32.totalorder %s2787_s2, %s2783_s12  ;;  %p2791_p4 = scmp.lt.u32.totalorder %s2783_s12, %s3398_s29 }
 0xb11   : > { %p2785_p12 = pnand %p2784_p11, %p3023_p3 }
 0xb12   : > { %p2790_p2 = por %p2789_p1, %p2788_p0 }
 0xb13   : > { %p2786_p13 = pneg %p2785_p12 }
 0xb14   : > { %p2792_p5 = por %p2791_p4, %p2790_p2 }
 0xb16   : > { %p2793_p6 = pnand %p2792_p5, %p2786_p13 }
 0xb18   : > { %2796 = shalt.err (!%p2793_p6)
}
 0xb19   : > { %2665 = dma.vmem_to_hbm [thread:$0]  (%p3023_p3), %s2134_s30, 128, %s3398_s29, %s2120_s21  }
 0xb1a PF: > { %s3544_s26 = sld [smem:[#allocation13_spill]]  ;;  %s3545_s3 = sld [smem:[#allocation6_spill]] }
 0xb20   : > { %p2671_p7 = scmp.ge.s32.totalorder %s3544_s26, 2  ;;  %s2145_s23 = sand.u32 1, %s3545_s3  }
 0xb21   : > { %s2146_s6 = scalar_lea.sflag [#allocation4], %s2145_s23 }
 0xb22   : > { %p2668_p8 = pnand %p2671_p7, %p3033_p9 }
 0xb24   : > { %2830 = dma.done.wait (!%p2668_p8), %s2146_s6, 128  }
 0xb25   : > { %2832 = vsyncadd (!%p2668_p8), %s2146_s6, 4294967168  ;;  %s31_s20 = sadd.s32 1, %s3544_s26   ;;  %s3547_s27 = sld [smem:[#allocation7_spill]] }
 0xb26   : > { %p28_p10 = scmp.ge.s32.totalorder %s31_s20, 6   ;;  %s3548_s28 = sld [smem:[#allocation8_spill]] }
 0xb27   : > { %s3549_s29 = sld [smem:[#allocation18_spill]]  ;;  %s3550_s30 = sld [smem:[#allocation11_spill]] }
 0xb28   : > { %s3551_s0 = sld [smem:[#allocation12_spill]]  ;;  %s3552_s19 = sld [smem:[#allocation14_spill]] }
 0xb29   : > { %s3553_s1 = sld [smem:[#allocation16_spill]]  ;;  %30 = sbr.rel (!%p28_p10) target bundleno = 19 (0x13), region = 180 }
 0xb30   :  { %2151 = vsyncpa [#allocation4], 1 }
 0xb31   :  { %2153 = vsyncpa [#allocation4 + $0x1], 1 }

</bundles_post_ra>
